<compile_context>
chip_gen: v5e
topology: v5e:2x2
jax: 0.10.0
libtpu: 0.0.40
codegen_flags: <defaults>
</compile_context>

<pallas_src>
import jax
import jax.numpy as jnp
from jax.experimental import pallas as pl
from jax.experimental.pallas import tpu as pltpu

HID = 128          # hidden width of the GCN blocks
K_IN = 3           # raw node-feature width
KPAD = 16          # zero-padded feature width (= bf16 sublane tile, clean MXU matmul)
MID = 32           # head hidden width
OUTPAD = 128       # lane-dense head output width (only column 0 is real)
EPS = 1e-5         # BatchNorm1d default eps
LEAKY = 0.01       # nn.LeakyReLU default negative_slope


# ---------------------------------------------------------------------------
# The single fused Pallas kernel
# ---------------------------------------------------------------------------
def _gcnb_fused_kernel(adj_ref, x0_ref, temb_ref,
                       w1_ref, b1_ref,
                       wc1_ref, bc1_ref, wc2_ref, bc2_ref, wc3_ref, bc3_ref,
                       gamma_ref, beta_ref,
                       w2_ref, b2_ref, w3_ref, b3_ref,
                       out_ref):
    f32 = jnp.float32
    bf16 = jnp.bfloat16
    N = adj_ref.shape[0]          # nodes
    BN = x0_ref.shape[0]          # batch * nodes (batch on sublanes)
    B = BN // N

    # ---- graph normalization: computed ONCE, fully folded into norm_adj --------
    # norm_adj[i,j] = adj[i,j] / sqrt(deg_i) / sqrt(deg_j)   (deg = row sums, like
    # the torch reference; no zero-degree guard, matching the reference).
    adj = adj_ref[...]                                        # (N, N) f32
    deg = jnp.sum(adj, axis=1, keepdims=True)                 # (N, 1)
    dn = jax.lax.rsqrt(deg)                                   # D^{-1/2}
    rid = jax.lax.broadcasted_iota(jnp.int32, (N, N), 0)
    cid = jax.lax.broadcasted_iota(jnp.int32, (N, N), 1)
    diag_dn = jnp.where(rid == cid, dn, 0.0)                  # diag(D^{-1/2})
    # (adj * dn) @ diag(dn): folds the column scale without a transpose; one tiny
    # (N,N)@(N,N) matmul done once per launch, reused by all 6 blocks.
    norm_adj = jnp.dot(adj * dn, diag_dn, preferred_element_type=f32)

    gamma = gamma_ref[...]                                    # (B*N, 1) per-node affine
    beta = beta_ref[...]

    # ---- embed: LeakyReLU(data @ W1 + b1) + t_emb  (Dropout = identity) --------
    h = jnp.dot(x0_ref[...], w1_ref[...], preferred_element_type=f32)   # bf16xbf16 -> (B*N, HID)
    h = h + b1_ref[...]
    h = jnp.where(h >= 0.0, h, LEAKY * h)
    x = h + temb_ref[...]                                     # (1, HID) broadcast

    inv_cnt = 1.0 / float(B * HID)      # BN stats count: (batch, feature) per node

    def gcn_block(x, w_ref, b_ref):
        # GraphConvolution: X@W with the dense (HID,HID) bf16 weight, all B*N rows
        # in one MXU matmul; aggregation uses the pre-normalized adjacency on each
        # batch sample (sublane-aligned value slices, N multiple of 8).
        xw = jnp.dot(x.astype(bf16), w_ref[...], preferred_element_type=f32)  # (B*N, HID)
        aggs = [jnp.dot(norm_adj, xw[b * N:(b + 1) * N, :],
                        preferred_element_type=f32) for b in range(B)]
        agg = jnp.concatenate(aggs, axis=0) if B > 1 else aggs[0]
        h = agg + xw + b_ref[...]
        h = jnp.where(h >= 0.0, h, LEAKY * h)                 # LeakyReLU(0.01)

        # BatchNorm1d(N): stats per node over (batch, feature). Batch copies of a
        # node sit N sublanes apart -> bring them together with XLU sublane rolls
        # (roll(h)^2 == roll(h^2), so only h is rolled).
        s1 = h
        s2 = h * h
        for j in range(1, B):
            hr = pltpu.roll(h, shift=j * N, axis=0)
            s1 = s1 + hr
            s2 = s2 + hr * hr
        mean = jnp.sum(s1, axis=1, keepdims=True) * inv_cnt   # (B*N, 1)
        ex2 = jnp.sum(s2, axis=1, keepdims=True) * inv_cnt
        var = jnp.maximum(ex2 - mean * mean, 0.0)             # guard vs. cancellation
        hn = (h - mean) * (jax.lax.rsqrt(var + EPS) * gamma) + beta

        # Mish(x) = x * tanh(softplus(x)); single-exp form with EUP reciprocal:
        #   tanh(softplus(x)) = u(u+2) / (u(u+2)+2),  u = e^x     (x <= 20)
        #   Mish(x) = x                                            (x >  20)
        u = jnp.exp(jnp.minimum(hn, 20.0))
        num = u * (u + 2.0)
        tsp = num * pl.reciprocal(num + 2.0, approx=True)
        mish = jnp.where(hn > 20.0, hn, hn * tsp)
        return mish + x                                       # residual

    # conv1 -> BN -> Mish -> +x
    x = gcn_block(x, wc1_ref, bc1_ref)
    # conv2 applied 4x with shared weights; tiny static trip count, unrolled.
    for _ in range(4):
        x = gcn_block(x, wc2_ref, bc2_ref)
    # conv3 -> BN -> Mish -> +x
    x = gcn_block(x, wc3_ref, bc3_ref)

    # ---- head: sigmoid(relu(x @ W2 + b2) @ W3 + b3), lane-dense store ----------
    h2 = jnp.dot(x.astype(bf16), w2_ref[...], preferred_element_type=f32) + b2_ref[...]
    h2 = jnp.maximum(h2, 0.0)                                            # (B*N, MID)
    o = jnp.dot(h2.astype(bf16), w3_ref[...], preferred_element_type=f32) + b3_ref[...]
    # sigmoid via EUP reciprocal (idle slot in the epilogue); clamp keeps exp finite.
    out_ref[...] = pl.reciprocal(1.0 + jnp.exp(-jnp.maximum(o, -60.0)), approx=True)


# ---------------------------------------------------------------------------
# Forward wrapper (single pallas_call; host side only does layout plumbing)
# ---------------------------------------------------------------------------
@jax.jit
def gcnb_forward(adj, data, t, params, t_table):
    B, N, K = data.shape

    # Batch folded onto the SUBLANE axis: row b*N + n holds data[b, n, :], feature
    # dim zero-padded K_IN -> KPAD. No python .at[].set loops (clean XLA fusion).
    x0 = jnp.pad(data.reshape(B * N, K).astype(jnp.float32),
                 ((0, 0), (0, KPAD - K))).astype(jnp.bfloat16)
    temb = t_table[t].reshape(1, HID)                         # (1, HID) f32

    args = (adj.astype(jnp.float32), x0, temb,
            params["w1"], params["b1"],
            params["wc1"], params["bc1"],
            params["wc2"], params["bc2"],
            params["wc3"], params["bc3"],
            params["gamma"], params["beta"],
            params["w2"], params["b2"],
            params["w3"], params["b3"])

    out = pl.pallas_call(
        _gcnb_fused_kernel,
        out_shape=jax.ShapeDtypeStruct((B * N, OUTPAD), jnp.float32),
        in_specs=[pl.BlockSpec(memory_space=pltpu.MemorySpace.VMEM)] * len(args),
        out_specs=pl.BlockSpec(memory_space=pltpu.MemorySpace.VMEM),
    )(*args)

    # column 0 holds the real logits; rows are batch-major -> reshape to (B, N)
    return out[:, 0].reshape(B, N)


# ---------------------------------------------------------------------------
# Parameter setup glue (host, once): spectral norm, bf16 weights, padding
# ---------------------------------------------------------------------------
def create_sin_cos_emb(dim):
    n_pos = jnp.arange(21, dtype=jnp.float32)
    omega = jnp.arange(dim // 2, dtype=jnp.float32) / (dim / 2.0)
    omega = 1.0 / (10000.0 ** omega)
    out = n_pos[:, None] * omega[None, :]
    emb = jnp.zeros((21, dim), jnp.float32)
    emb = emb.at[:, 0::2].set(jnp.sin(out))
    emb = emb.at[:, 1::2].set(jnp.cos(out))
    return emb


def spectral_normalize(w, iters=50):
    # torch spectral_norm reparametrization: divide by the top singular value.
    u = jnp.ones((w.shape[0],), jnp.float32)
    v = None
    for _ in range(iters):
        v = w.T @ u
        v = v / (jnp.linalg.norm(v) + 1e-12)
        u = w @ v
        u = u / (jnp.linalg.norm(u) + 1e-12)
    sigma = u @ (w @ v)
    return w / sigma


def init_params(key, n_nodes, batch):
    ks = jax.random.split(key, 12)
    f32 = jnp.float32
    bf16 = jnp.bfloat16
    B = batch

    # linears: spectral_norm(Linear(3,128)); zero-pad feature dim 3 -> KPAD
    w1 = spectral_normalize(jax.random.normal(ks[0], (K_IN, HID), f32) * 0.3)
    w1p = jnp.zeros((KPAD, HID), f32).at[:K_IN].set(w1)
    b1 = jax.random.normal(ks[1], (HID,), f32) * 0.1
    # GraphConvolution weights (torch.randn init), spectral-normalized
    wc1 = spectral_normalize(jax.random.normal(ks[2], (HID, HID), f32))
    bc1 = jax.random.normal(ks[3], (HID,), f32)
    wc2 = spectral_normalize(jax.random.normal(ks[4], (HID, HID), f32))
    bc2 = jax.random.normal(ks[5], (HID,), f32)
    wc3 = spectral_normalize(jax.random.normal(ks[6], (HID, HID), f32))
    bc3 = jax.random.normal(ks[7], (HID,), f32)
    # head: spectral_norm(Linear(128,32)) and spectral_norm(Linear(32,1))
    w2 = spectral_normalize(jax.random.normal(ks[8], (HID, MID), f32) * 0.1)
    b2 = jax.random.normal(ks[9], (MID,), f32) * 0.1
    w3 = spectral_normalize(jax.random.normal(ks[10], (MID, 1), f32) * 0.1)
    b3 = jax.random.normal(ks[11], (1,), f32) * 0.1

    # lane-dense head projection: the real logit lives in output column 0.
    w3_pad = jnp.zeros((MID, OUTPAD), f32).at[:, 0].set(w3[:, 0])
    b3_pad = jnp.zeros((1, OUTPAD), f32).at[0, 0].set(b3[0])

    row = lambda v: v.reshape(1, -1).astype(f32)

    return {
        # matmul weights stored bf16 (MXU-native); biases / affines stay f32.
        "w1": w1p.astype(bf16), "b1": row(b1),
        "wc1": wc1.astype(bf16), "bc1": row(bc1),
        "wc2": wc2.astype(bf16), "bc2": row(bc2),
        "wc3": wc3.astype(bf16), "bc3": row(bc3),
        # BatchNorm1d(n_nodes) affine params, tiled per (batch, node) sublane row.
        "gamma": jnp.ones((B * n_nodes, 1), f32),
        "beta": jnp.zeros((B * n_nodes, 1), f32),
        "w2": w2.astype(bf16), "b2": row(b2),
        "w3": w3_pad.astype(bf16), "b3": b3_pad,
    }


if __name__ == "__main__":
    B, N = 2, 16      # batch=2, graph with 16 nodes, node features=3
    key = jax.random.PRNGKey(0)
    kg, kd, kp = jax.random.split(key, 3)

    g = jax.random.uniform(kg, (N, N), jnp.float32, minval=0.1, maxval=1.0)
    data = jax.random.normal(kd, (B, N, 3), jnp.float32)
    t = 5             # diffusion timestep index into the 21-entry sin/cos table

    t_table = create_sin_cos_emb(HID)        # hoisted: built once, not per step
    params = init_params(kp, n_nodes=N, batch=B)

    out = gcnb_forward(g, data, t, params, t_table)
    out = jax.block_until_ready(out)
    assert out.shape == (B, N), out.shape
    assert bool(jnp.all(jnp.isfinite(out)))
    print("KERNEL_OK")
</pallas_src>

<mosaic_0001>
module attributes {stable_mosaic.version = 11 : i64} {
  func.func @_gcnb_fused_kernel(%arg0: memref<16x16xf32, #tpu.memory_space<vmem>>, %arg1: memref<32x16xbf16, #tpu.memory_space<vmem>>, %arg2: memref<1x128xf32, #tpu.memory_space<vmem>>, %arg3: memref<16x128xbf16, #tpu.memory_space<vmem>>, %arg4: memref<1x128xf32, #tpu.memory_space<vmem>>, %arg5: memref<128x128xbf16, #tpu.memory_space<vmem>>, %arg6: memref<1x128xf32, #tpu.memory_space<vmem>>, %arg7: memref<128x128xbf16, #tpu.memory_space<vmem>>, %arg8: memref<1x128xf32, #tpu.memory_space<vmem>>, %arg9: memref<128x128xbf16, #tpu.memory_space<vmem>>, %arg10: memref<1x128xf32, #tpu.memory_space<vmem>>, %arg11: memref<32x1xf32, #tpu.memory_space<vmem>>, %arg12: memref<32x1xf32, #tpu.memory_space<vmem>>, %arg13: memref<128x32xbf16, #tpu.memory_space<vmem>>, %arg14: memref<1x32xf32, #tpu.memory_space<vmem>>, %arg15: memref<32x128xbf16, #tpu.memory_space<vmem>>, %arg16: memref<1x128xf32, #tpu.memory_space<vmem>>, %arg17: memref<32x128xf32, #tpu.memory_space<vmem>>) attributes {dimension_semantics = [], scalar_prefetch = 0 : i64, scratch_operands = 0 : i64, tpu.core_type = #tpu.core_type<tc>} {
    %c0 = arith.constant 0 : index
    %c0_0 = arith.constant 0 : index
    %0 = vector.load %arg0[%c0, %c0_0] : memref<16x16xf32, #tpu.memory_space<vmem>>, vector<16x16xf32>
    %cst = arith.constant dense<0.000000e+00> : vector<16xf32>
    %1 = vector.multi_reduction <add>, %0, %cst [1] : vector<16x16xf32> to vector<16xf32>
    %2 = vector.shape_cast %1 : vector<16xf32> to vector<16x1xf32>
    %3 = math.rsqrt %2 : vector<16x1xf32>
    %4 = tpu.iota {dimensions = array<i32: 0>} : vector<16x16xi32>
    %5 = tpu.iota {dimensions = array<i32: 1>} : vector<16x16xi32>
    %6 = arith.cmpi eq, %4, %5 : vector<16x16xi32>
    %cst_1 = arith.constant 0.000000e+00 : f32
    %7 = vector.shape_cast %3 : vector<16x1xf32> to vector<16x1xf32>
    %8 = vector.broadcast %7 : vector<16x1xf32> to vector<16x16xf32>
    %9 = vector.broadcast %cst_1 : f32 to vector<16x16xf32>
    %10 = arith.select %6, %8, %9 : vector<16x16xi1>, vector<16x16xf32>
    %11 = vector.broadcast %3 : vector<16x1xf32> to vector<16x16xf32>
    %12 = arith.mulf %0, %11 : vector<16x16xf32>
    %cst_2 = arith.constant dense<0.000000e+00> : vector<16x16xf32>
    %13 = tpu.matmul %12, %10, %cst_2 {dimension_numbers = #tpu.dot_dimension_numbers<[1], [0], [0], [1], [0, 0, 1, 1], [], []>} : vector<16x16xf32>, vector<16x16xf32>, vector<16x16xf32> -> vector<16x16xf32>
    %c0_3 = arith.constant 0 : index
    %c0_4 = arith.constant 0 : index
    %14 = vector.load %arg11[%c0_3, %c0_4] : memref<32x1xf32, #tpu.memory_space<vmem>>, vector<32x1xf32>
    %c0_5 = arith.constant 0 : index
    %c0_6 = arith.constant 0 : index
    %15 = vector.load %arg12[%c0_5, %c0_6] : memref<32x1xf32, #tpu.memory_space<vmem>>, vector<32x1xf32>
    %c0_7 = arith.constant 0 : index
    %c0_8 = arith.constant 0 : index
    %16 = vector.load %arg1[%c0_7, %c0_8] : memref<32x16xbf16, #tpu.memory_space<vmem>>, vector<32x16xbf16>
    %c0_9 = arith.constant 0 : index
    %c0_10 = arith.constant 0 : index
    %17 = vector.load %arg3[%c0_9, %c0_10] : memref<16x128xbf16, #tpu.memory_space<vmem>>, vector<16x128xbf16>
    %cst_11 = arith.constant dense<0.000000e+00> : vector<32x128xf32>
    %18 = tpu.matmul %16, %17, %cst_11 {dimension_numbers = #tpu.dot_dimension_numbers<[1], [0], [0], [1], [0, 0, 1, 1], [], []>} : vector<32x16xbf16>, vector<16x128xbf16>, vector<32x128xf32> -> vector<32x128xf32>
    %c0_12 = arith.constant 0 : index
    %c0_13 = arith.constant 0 : index
    %19 = vector.load %arg4[%c0_12, %c0_13] : memref<1x128xf32, #tpu.memory_space<vmem>>, vector<1x128xf32>
    %20 = vector.broadcast %19 : vector<1x128xf32> to vector<32x128xf32>
    %21 = arith.addf %18, %20 : vector<32x128xf32>
    %cst_14 = arith.constant 0.000000e+00 : f32
    %22 = vector.broadcast %cst_14 : f32 to vector<32x128xf32>
    %23 = arith.cmpf oge, %21, %22 : vector<32x128xf32>
    %cst_15 = arith.constant 0.00999999977 : f32
    %24 = vector.broadcast %cst_15 : f32 to vector<32x128xf32>
    %25 = arith.mulf %24, %21 : vector<32x128xf32>
    %26 = arith.select %23, %21, %25 : vector<32x128xi1>, vector<32x128xf32>
    %c0_16 = arith.constant 0 : index
    %c0_17 = arith.constant 0 : index
    %27 = vector.load %arg2[%c0_16, %c0_17] : memref<1x128xf32, #tpu.memory_space<vmem>>, vector<1x128xf32>
    %28 = vector.broadcast %27 : vector<1x128xf32> to vector<32x128xf32>
    %29 = arith.addf %26, %28 : vector<32x128xf32>
    %30 = arith.truncf %29 : vector<32x128xf32> to vector<32x128xbf16>
    %c0_18 = arith.constant 0 : index
    %c0_19 = arith.constant 0 : index
    %31 = vector.load %arg5[%c0_18, %c0_19] : memref<128x128xbf16, #tpu.memory_space<vmem>>, vector<128x128xbf16>
    %cst_20 = arith.constant dense<0.000000e+00> : vector<32x128xf32>
    %32 = tpu.matmul %30, %31, %cst_20 {dimension_numbers = #tpu.dot_dimension_numbers<[1], [0], [0], [1], [0, 0, 1, 1], [], []>} : vector<32x128xbf16>, vector<128x128xbf16>, vector<32x128xf32> -> vector<32x128xf32>
    %33 = vector.extract_strided_slice %32 {offsets = [0, 0], sizes = [16, 128], strides = [1, 1]} : vector<32x128xf32> to vector<16x128xf32>
    %cst_21 = arith.constant dense<0.000000e+00> : vector<16x128xf32>
    %34 = tpu.matmul %13, %33, %cst_21 {dimension_numbers = #tpu.dot_dimension_numbers<[1], [0], [0], [1], [0, 0, 1, 1], [], []>} : vector<16x16xf32>, vector<16x128xf32>, vector<16x128xf32> -> vector<16x128xf32>
    %35 = vector.extract_strided_slice %32 {offsets = [16, 0], sizes = [16, 128], strides = [1, 1]} : vector<32x128xf32> to vector<16x128xf32>
    %cst_22 = arith.constant dense<0.000000e+00> : vector<16x128xf32>
    %36 = tpu.matmul %13, %35, %cst_22 {dimension_numbers = #tpu.dot_dimension_numbers<[1], [0], [0], [1], [0, 0, 1, 1], [], []>} : vector<16x16xf32>, vector<16x128xf32>, vector<16x128xf32> -> vector<16x128xf32>
    %37 = tpu.concatenate %34, %36 in 0 : vector<16x128xf32>, vector<16x128xf32> -> vector<32x128xf32>
    %38 = arith.addf %37, %32 : vector<32x128xf32>
    %c0_23 = arith.constant 0 : index
    %c0_24 = arith.constant 0 : index
    %39 = vector.load %arg6[%c0_23, %c0_24] : memref<1x128xf32, #tpu.memory_space<vmem>>, vector<1x128xf32>
    %40 = vector.broadcast %39 : vector<1x128xf32> to vector<32x128xf32>
    %41 = arith.addf %38, %40 : vector<32x128xf32>
    %cst_25 = arith.constant 0.000000e+00 : f32
    %42 = vector.broadcast %cst_25 : f32 to vector<32x128xf32>
    %43 = arith.cmpf oge, %41, %42 : vector<32x128xf32>
    %cst_26 = arith.constant 0.00999999977 : f32
    %44 = vector.broadcast %cst_26 : f32 to vector<32x128xf32>
    %45 = arith.mulf %44, %41 : vector<32x128xf32>
    %46 = arith.select %43, %41, %45 : vector<32x128xi1>, vector<32x128xf32>
    %47 = arith.mulf %46, %46 : vector<32x128xf32>
    %c16_i32 = arith.constant 16 : i32
    %48 = tpu.dynamic_rotate %46 by %c16_i32 dim 0 : vector<32x128xf32>, i32 -> vector<32x128xf32>
    %49 = arith.addf %46, %48 : vector<32x128xf32>
    %50 = arith.mulf %48, %48 : vector<32x128xf32>
    %51 = arith.addf %47, %50 : vector<32x128xf32>
    %cst_27 = arith.constant dense<0.000000e+00> : vector<32xf32>
    %52 = vector.multi_reduction <add>, %49, %cst_27 [1] : vector<32x128xf32> to vector<32xf32>
    %53 = vector.shape_cast %52 : vector<32xf32> to vector<32x1xf32>
    %cst_28 = arith.constant 3.906250e-03 : f32
    %54 = vector.broadcast %cst_28 : f32 to vector<32x1xf32>
    %55 = arith.mulf %53, %54 : vector<32x1xf32>
    %cst_29 = arith.constant dense<0.000000e+00> : vector<32xf32>
    %56 = vector.multi_reduction <add>, %51, %cst_29 [1] : vector<32x128xf32> to vector<32xf32>
    %57 = vector.shape_cast %56 : vector<32xf32> to vector<32x1xf32>
    %cst_30 = arith.constant 3.906250e-03 : f32
    %58 = vector.broadcast %cst_30 : f32 to vector<32x1xf32>
    %59 = arith.mulf %57, %58 : vector<32x1xf32>
    %60 = arith.mulf %55, %55 : vector<32x1xf32>
    %61 = arith.subf %59, %60 : vector<32x1xf32>
    %cst_31 = arith.constant 0.000000e+00 : f32
    %62 = vector.broadcast %cst_31 : f32 to vector<32x1xf32>
    %63 = arith.maximumf %61, %62 : vector<32x1xf32>
    %64 = vector.broadcast %55 : vector<32x1xf32> to vector<32x128xf32>
    %65 = arith.subf %46, %64 : vector<32x128xf32>
    %cst_32 = arith.constant 9.99999974E-6 : f32
    %66 = vector.broadcast %cst_32 : f32 to vector<32x1xf32>
    %67 = arith.addf %63, %66 : vector<32x1xf32>
    %68 = math.rsqrt %67 : vector<32x1xf32>
    %69 = arith.mulf %68, %14 : vector<32x1xf32>
    %70 = vector.broadcast %69 : vector<32x1xf32> to vector<32x128xf32>
    %71 = arith.mulf %65, %70 : vector<32x128xf32>
    %72 = vector.broadcast %15 : vector<32x1xf32> to vector<32x128xf32>
    %73 = arith.addf %71, %72 : vector<32x128xf32>
    %cst_33 = arith.constant 2.000000e+01 : f32
    %74 = vector.broadcast %cst_33 : f32 to vector<32x128xf32>
    %75 = arith.minimumf %73, %74 : vector<32x128xf32>
    %76 = math.exp %75 : vector<32x128xf32>
    %cst_34 = arith.constant 2.000000e+00 : f32
    %77 = vector.broadcast %cst_34 : f32 to vector<32x128xf32>
    %78 = arith.addf %76, %77 : vector<32x128xf32>
    %79 = arith.mulf %76, %78 : vector<32x128xf32>
    %cst_35 = arith.constant 2.000000e+00 : f32
    %80 = vector.broadcast %cst_35 : f32 to vector<32x128xf32>
    %81 = arith.addf %79, %80 : vector<32x128xf32>
    %82 = tpu.reciprocal %81 {approx = true} : vector<32x128xf32> -> vector<32x128xf32>
    %83 = arith.mulf %79, %82 : vector<32x128xf32>
    %cst_36 = arith.constant 2.000000e+01 : f32
    %84 = vector.broadcast %cst_36 : f32 to vector<32x128xf32>
    %85 = arith.cmpf ogt, %73, %84 : vector<32x128xf32>
    %86 = arith.mulf %73, %83 : vector<32x128xf32>
    %87 = arith.select %85, %73, %86 : vector<32x128xi1>, vector<32x128xf32>
    %88 = arith.addf %87, %29 : vector<32x128xf32>
    %89 = arith.truncf %88 : vector<32x128xf32> to vector<32x128xbf16>
    %c0_37 = arith.constant 0 : index
    %c0_38 = arith.constant 0 : index
    %90 = vector.load %arg7[%c0_37, %c0_38] : memref<128x128xbf16, #tpu.memory_space<vmem>>, vector<128x128xbf16>
    %cst_39 = arith.constant dense<0.000000e+00> : vector<32x128xf32>
    %91 = tpu.matmul %89, %90, %cst_39 {dimension_numbers = #tpu.dot_dimension_numbers<[1], [0], [0], [1], [0, 0, 1, 1], [], []>} : vector<32x128xbf16>, vector<128x128xbf16>, vector<32x128xf32> -> vector<32x128xf32>
    %92 = vector.extract_strided_slice %91 {offsets = [0, 0], sizes = [16, 128], strides = [1, 1]} : vector<32x128xf32> to vector<16x128xf32>
    %cst_40 = arith.constant dense<0.000000e+00> : vector<16x128xf32>
    %93 = tpu.matmul %13, %92, %cst_40 {dimension_numbers = #tpu.dot_dimension_numbers<[1], [0], [0], [1], [0, 0, 1, 1], [], []>} : vector<16x16xf32>, vector<16x128xf32>, vector<16x128xf32> -> vector<16x128xf32>
    %94 = vector.extract_strided_slice %91 {offsets = [16, 0], sizes = [16, 128], strides = [1, 1]} : vector<32x128xf32> to vector<16x128xf32>
    %cst_41 = arith.constant dense<0.000000e+00> : vector<16x128xf32>
    %95 = tpu.matmul %13, %94, %cst_41 {dimension_numbers = #tpu.dot_dimension_numbers<[1], [0], [0], [1], [0, 0, 1, 1], [], []>} : vector<16x16xf32>, vector<16x128xf32>, vector<16x128xf32> -> vector<16x128xf32>
    %96 = tpu.concatenate %93, %95 in 0 : vector<16x128xf32>, vector<16x128xf32> -> vector<32x128xf32>
    %97 = arith.addf %96, %91 : vector<32x128xf32>
    %c0_42 = arith.constant 0 : index
    %c0_43 = arith.constant 0 : index
    %98 = vector.load %arg8[%c0_42, %c0_43] : memref<1x128xf32, #tpu.memory_space<vmem>>, vector<1x128xf32>
    %99 = vector.broadcast %98 : vector<1x128xf32> to vector<32x128xf32>
    %100 = arith.addf %97, %99 : vector<32x128xf32>
    %cst_44 = arith.constant 0.000000e+00 : f32
    %101 = vector.broadcast %cst_44 : f32 to vector<32x128xf32>
    %102 = arith.cmpf oge, %100, %101 : vector<32x128xf32>
    %cst_45 = arith.constant 0.00999999977 : f32
    %103 = vector.broadcast %cst_45 : f32 to vector<32x128xf32>
    %104 = arith.mulf %103, %100 : vector<32x128xf32>
    %105 = arith.select %102, %100, %104 : vector<32x128xi1>, vector<32x128xf32>
    %106 = arith.mulf %105, %105 : vector<32x128xf32>
    %c16_i32_46 = arith.constant 16 : i32
    %107 = tpu.dynamic_rotate %105 by %c16_i32_46 dim 0 : vector<32x128xf32>, i32 -> vector<32x128xf32>
    %108 = arith.addf %105, %107 : vector<32x128xf32>
    %109 = arith.mulf %107, %107 : vector<32x128xf32>
    %110 = arith.addf %106, %109 : vector<32x128xf32>
    %cst_47 = arith.constant dense<0.000000e+00> : vector<32xf32>
    %111 = vector.multi_reduction <add>, %108, %cst_47 [1] : vector<32x128xf32> to vector<32xf32>
    %112 = vector.shape_cast %111 : vector<32xf32> to vector<32x1xf32>
    %cst_48 = arith.constant 3.906250e-03 : f32
    %113 = vector.broadcast %cst_48 : f32 to vector<32x1xf32>
    %114 = arith.mulf %112, %113 : vector<32x1xf32>
    %cst_49 = arith.constant dense<0.000000e+00> : vector<32xf32>
    %115 = vector.multi_reduction <add>, %110, %cst_49 [1] : vector<32x128xf32> to vector<32xf32>
    %116 = vector.shape_cast %115 : vector<32xf32> to vector<32x1xf32>
    %cst_50 = arith.constant 3.906250e-03 : f32
    %117 = vector.broadcast %cst_50 : f32 to vector<32x1xf32>
    %118 = arith.mulf %116, %117 : vector<32x1xf32>
    %119 = arith.mulf %114, %114 : vector<32x1xf32>
    %120 = arith.subf %118, %119 : vector<32x1xf32>
    %cst_51 = arith.constant 0.000000e+00 : f32
    %121 = vector.broadcast %cst_51 : f32 to vector<32x1xf32>
    %122 = arith.maximumf %120, %121 : vector<32x1xf32>
    %123 = vector.broadcast %114 : vector<32x1xf32> to vector<32x128xf32>
    %124 = arith.subf %105, %123 : vector<32x128xf32>
    %cst_52 = arith.constant 9.99999974E-6 : f32
    %125 = vector.broadcast %cst_52 : f32 to vector<32x1xf32>
    %126 = arith.addf %122, %125 : vector<32x1xf32>
    %127 = math.rsqrt %126 : vector<32x1xf32>
    %128 = arith.mulf %127, %14 : vector<32x1xf32>
    %129 = vector.broadcast %128 : vector<32x1xf32> to vector<32x128xf32>
    %130 = arith.mulf %124, %129 : vector<32x128xf32>
    %131 = vector.broadcast %15 : vector<32x1xf32> to vector<32x128xf32>
    %132 = arith.addf %130, %131 : vector<32x128xf32>
    %cst_53 = arith.constant 2.000000e+01 : f32
    %133 = vector.broadcast %cst_53 : f32 to vector<32x128xf32>
    %134 = arith.minimumf %132, %133 : vector<32x128xf32>
    %135 = math.exp %134 : vector<32x128xf32>
    %cst_54 = arith.constant 2.000000e+00 : f32
    %136 = vector.broadcast %cst_54 : f32 to vector<32x128xf32>
    %137 = arith.addf %135, %136 : vector<32x128xf32>
    %138 = arith.mulf %135, %137 : vector<32x128xf32>
    %cst_55 = arith.constant 2.000000e+00 : f32
    %139 = vector.broadcast %cst_55 : f32 to vector<32x128xf32>
    %140 = arith.addf %138, %139 : vector<32x128xf32>
    %141 = tpu.reciprocal %140 {approx = true} : vector<32x128xf32> -> vector<32x128xf32>
    %142 = arith.mulf %138, %141 : vector<32x128xf32>
    %cst_56 = arith.constant 2.000000e+01 : f32
    %143 = vector.broadcast %cst_56 : f32 to vector<32x128xf32>
    %144 = arith.cmpf ogt, %132, %143 : vector<32x128xf32>
    %145 = arith.mulf %132, %142 : vector<32x128xf32>
    %146 = arith.select %144, %132, %145 : vector<32x128xi1>, vector<32x128xf32>
    %147 = arith.addf %146, %88 : vector<32x128xf32>
    %148 = arith.truncf %147 : vector<32x128xf32> to vector<32x128xbf16>
    %c0_57 = arith.constant 0 : index
    %c0_58 = arith.constant 0 : index
    %149 = vector.load %arg7[%c0_57, %c0_58] : memref<128x128xbf16, #tpu.memory_space<vmem>>, vector<128x128xbf16>
    %cst_59 = arith.constant dense<0.000000e+00> : vector<32x128xf32>
    %150 = tpu.matmul %148, %149, %cst_59 {dimension_numbers = #tpu.dot_dimension_numbers<[1], [0], [0], [1], [0, 0, 1, 1], [], []>} : vector<32x128xbf16>, vector<128x128xbf16>, vector<32x128xf32> -> vector<32x128xf32>
    %151 = vector.extract_strided_slice %150 {offsets = [0, 0], sizes = [16, 128], strides = [1, 1]} : vector<32x128xf32> to vector<16x128xf32>
    %cst_60 = arith.constant dense<0.000000e+00> : vector<16x128xf32>
    %152 = tpu.matmul %13, %151, %cst_60 {dimension_numbers = #tpu.dot_dimension_numbers<[1], [0], [0], [1], [0, 0, 1, 1], [], []>} : vector<16x16xf32>, vector<16x128xf32>, vector<16x128xf32> -> vector<16x128xf32>
    %153 = vector.extract_strided_slice %150 {offsets = [16, 0], sizes = [16, 128], strides = [1, 1]} : vector<32x128xf32> to vector<16x128xf32>
    %cst_61 = arith.constant dense<0.000000e+00> : vector<16x128xf32>
    %154 = tpu.matmul %13, %153, %cst_61 {dimension_numbers = #tpu.dot_dimension_numbers<[1], [0], [0], [1], [0, 0, 1, 1], [], []>} : vector<16x16xf32>, vector<16x128xf32>, vector<16x128xf32> -> vector<16x128xf32>
    %155 = tpu.concatenate %152, %154 in 0 : vector<16x128xf32>, vector<16x128xf32> -> vector<32x128xf32>
    %156 = arith.addf %155, %150 : vector<32x128xf32>
    %c0_62 = arith.constant 0 : index
    %c0_63 = arith.constant 0 : index
    %157 = vector.load %arg8[%c0_62, %c0_63] : memref<1x128xf32, #tpu.memory_space<vmem>>, vector<1x128xf32>
    %158 = vector.broadcast %157 : vector<1x128xf32> to vector<32x128xf32>
    %159 = arith.addf %156, %158 : vector<32x128xf32>
    %cst_64 = arith.constant 0.000000e+00 : f32
    %160 = vector.broadcast %cst_64 : f32 to vector<32x128xf32>
    %161 = arith.cmpf oge, %159, %160 : vector<32x128xf32>
    %cst_65 = arith.constant 0.00999999977 : f32
    %162 = vector.broadcast %cst_65 : f32 to vector<32x128xf32>
    %163 = arith.mulf %162, %159 : vector<32x128xf32>
    %164 = arith.select %161, %159, %163 : vector<32x128xi1>, vector<32x128xf32>
    %165 = arith.mulf %164, %164 : vector<32x128xf32>
    %c16_i32_66 = arith.constant 16 : i32
    %166 = tpu.dynamic_rotate %164 by %c16_i32_66 dim 0 : vector<32x128xf32>, i32 -> vector<32x128xf32>
    %167 = arith.addf %164, %166 : vector<32x128xf32>
    %168 = arith.mulf %166, %166 : vector<32x128xf32>
    %169 = arith.addf %165, %168 : vector<32x128xf32>
    %cst_67 = arith.constant dense<0.000000e+00> : vector<32xf32>
    %170 = vector.multi_reduction <add>, %167, %cst_67 [1] : vector<32x128xf32> to vector<32xf32>
    %171 = vector.shape_cast %170 : vector<32xf32> to vector<32x1xf32>
    %cst_68 = arith.constant 3.906250e-03 : f32
    %172 = vector.broadcast %cst_68 : f32 to vector<32x1xf32>
    %173 = arith.mulf %171, %172 : vector<32x1xf32>
    %cst_69 = arith.constant dense<0.000000e+00> : vector<32xf32>
    %174 = vector.multi_reduction <add>, %169, %cst_69 [1] : vector<32x128xf32> to vector<32xf32>
    %175 = vector.shape_cast %174 : vector<32xf32> to vector<32x1xf32>
    %cst_70 = arith.constant 3.906250e-03 : f32
    %176 = vector.broadcast %cst_70 : f32 to vector<32x1xf32>
    %177 = arith.mulf %175, %176 : vector<32x1xf32>
    %178 = arith.mulf %173, %173 : vector<32x1xf32>
    %179 = arith.subf %177, %178 : vector<32x1xf32>
    %cst_71 = arith.constant 0.000000e+00 : f32
    %180 = vector.broadcast %cst_71 : f32 to vector<32x1xf32>
    %181 = arith.maximumf %179, %180 : vector<32x1xf32>
    %182 = vector.broadcast %173 : vector<32x1xf32> to vector<32x128xf32>
    %183 = arith.subf %164, %182 : vector<32x128xf32>
    %cst_72 = arith.constant 9.99999974E-6 : f32
    %184 = vector.broadcast %cst_72 : f32 to vector<32x1xf32>
    %185 = arith.addf %181, %184 : vector<32x1xf32>
    %186 = math.rsqrt %185 : vector<32x1xf32>
    %187 = arith.mulf %186, %14 : vector<32x1xf32>
    %188 = vector.broadcast %187 : vector<32x1xf32> to vector<32x128xf32>
    %189 = arith.mulf %183, %188 : vector<32x128xf32>
    %190 = vector.broadcast %15 : vector<32x1xf32> to vector<32x128xf32>
    %191 = arith.addf %189, %190 : vector<32x128xf32>
    %cst_73 = arith.constant 2.000000e+01 : f32
    %192 = vector.broadcast %cst_73 : f32 to vector<32x128xf32>
    %193 = arith.minimumf %191, %192 : vector<32x128xf32>
    %194 = math.exp %193 : vector<32x128xf32>
    %cst_74 = arith.constant 2.000000e+00 : f32
    %195 = vector.broadcast %cst_74 : f32 to vector<32x128xf32>
    %196 = arith.addf %194, %195 : vector<32x128xf32>
    %197 = arith.mulf %194, %196 : vector<32x128xf32>
    %cst_75 = arith.constant 2.000000e+00 : f32
    %198 = vector.broadcast %cst_75 : f32 to vector<32x128xf32>
    %199 = arith.addf %197, %198 : vector<32x128xf32>
    %200 = tpu.reciprocal %199 {approx = true} : vector<32x128xf32> -> vector<32x128xf32>
    %201 = arith.mulf %197, %200 : vector<32x128xf32>
    %cst_76 = arith.constant 2.000000e+01 : f32
    %202 = vector.broadcast %cst_76 : f32 to vector<32x128xf32>
    %203 = arith.cmpf ogt, %191, %202 : vector<32x128xf32>
    %204 = arith.mulf %191, %201 : vector<32x128xf32>
    %205 = arith.select %203, %191, %204 : vector<32x128xi1>, vector<32x128xf32>
    %206 = arith.addf %205, %147 : vector<32x128xf32>
    %207 = arith.truncf %206 : vector<32x128xf32> to vector<32x128xbf16>
    %c0_77 = arith.constant 0 : index
    %c0_78 = arith.constant 0 : index
    %208 = vector.load %arg7[%c0_77, %c0_78] : memref<128x128xbf16, #tpu.memory_space<vmem>>, vector<128x128xbf16>
    %cst_79 = arith.constant dense<0.000000e+00> : vector<32x128xf32>
    %209 = tpu.matmul %207, %208, %cst_79 {dimension_numbers = #tpu.dot_dimension_numbers<[1], [0], [0], [1], [0, 0, 1, 1], [], []>} : vector<32x128xbf16>, vector<128x128xbf16>, vector<32x128xf32> -> vector<32x128xf32>
    %210 = vector.extract_strided_slice %209 {offsets = [0, 0], sizes = [16, 128], strides = [1, 1]} : vector<32x128xf32> to vector<16x128xf32>
    %cst_80 = arith.constant dense<0.000000e+00> : vector<16x128xf32>
    %211 = tpu.matmul %13, %210, %cst_80 {dimension_numbers = #tpu.dot_dimension_numbers<[1], [0], [0], [1], [0, 0, 1, 1], [], []>} : vector<16x16xf32>, vector<16x128xf32>, vector<16x128xf32> -> vector<16x128xf32>
    %212 = vector.extract_strided_slice %209 {offsets = [16, 0], sizes = [16, 128], strides = [1, 1]} : vector<32x128xf32> to vector<16x128xf32>
    %cst_81 = arith.constant dense<0.000000e+00> : vector<16x128xf32>
    %213 = tpu.matmul %13, %212, %cst_81 {dimension_numbers = #tpu.dot_dimension_numbers<[1], [0], [0], [1], [0, 0, 1, 1], [], []>} : vector<16x16xf32>, vector<16x128xf32>, vector<16x128xf32> -> vector<16x128xf32>
    %214 = tpu.concatenate %211, %213 in 0 : vector<16x128xf32>, vector<16x128xf32> -> vector<32x128xf32>
    %215 = arith.addf %214, %209 : vector<32x128xf32>
    %c0_82 = arith.constant 0 : index
    %c0_83 = arith.constant 0 : index
    %216 = vector.load %arg8[%c0_82, %c0_83] : memref<1x128xf32, #tpu.memory_space<vmem>>, vector<1x128xf32>
    %217 = vector.broadcast %216 : vector<1x128xf32> to vector<32x128xf32>
    %218 = arith.addf %215, %217 : vector<32x128xf32>
    %cst_84 = arith.constant 0.000000e+00 : f32
    %219 = vector.broadcast %cst_84 : f32 to vector<32x128xf32>
    %220 = arith.cmpf oge, %218, %219 : vector<32x128xf32>
    %cst_85 = arith.constant 0.00999999977 : f32
    %221 = vector.broadcast %cst_85 : f32 to vector<32x128xf32>
    %222 = arith.mulf %221, %218 : vector<32x128xf32>
    %223 = arith.select %220, %218, %222 : vector<32x128xi1>, vector<32x128xf32>
    %224 = arith.mulf %223, %223 : vector<32x128xf32>
    %c16_i32_86 = arith.constant 16 : i32
    %225 = tpu.dynamic_rotate %223 by %c16_i32_86 dim 0 : vector<32x128xf32>, i32 -> vector<32x128xf32>
    %226 = arith.addf %223, %225 : vector<32x128xf32>
    %227 = arith.mulf %225, %225 : vector<32x128xf32>
    %228 = arith.addf %224, %227 : vector<32x128xf32>
    %cst_87 = arith.constant dense<0.000000e+00> : vector<32xf32>
    %229 = vector.multi_reduction <add>, %226, %cst_87 [1] : vector<32x128xf32> to vector<32xf32>
    %230 = vector.shape_cast %229 : vector<32xf32> to vector<32x1xf32>
    %cst_88 = arith.constant 3.906250e-03 : f32
    %231 = vector.broadcast %cst_88 : f32 to vector<32x1xf32>
    %232 = arith.mulf %230, %231 : vector<32x1xf32>
    %cst_89 = arith.constant dense<0.000000e+00> : vector<32xf32>
    %233 = vector.multi_reduction <add>, %228, %cst_89 [1] : vector<32x128xf32> to vector<32xf32>
    %234 = vector.shape_cast %233 : vector<32xf32> to vector<32x1xf32>
    %cst_90 = arith.constant 3.906250e-03 : f32
    %235 = vector.broadcast %cst_90 : f32 to vector<32x1xf32>
    %236 = arith.mulf %234, %235 : vector<32x1xf32>
    %237 = arith.mulf %232, %232 : vector<32x1xf32>
    %238 = arith.subf %236, %237 : vector<32x1xf32>
    %cst_91 = arith.constant 0.000000e+00 : f32
    %239 = vector.broadcast %cst_91 : f32 to vector<32x1xf32>
    %240 = arith.maximumf %238, %239 : vector<32x1xf32>
    %241 = vector.broadcast %232 : vector<32x1xf32> to vector<32x128xf32>
    %242 = arith.subf %223, %241 : vector<32x128xf32>
    %cst_92 = arith.constant 9.99999974E-6 : f32
    %243 = vector.broadcast %cst_92 : f32 to vector<32x1xf32>
    %244 = arith.addf %240, %243 : vector<32x1xf32>
    %245 = math.rsqrt %244 : vector<32x1xf32>
    %246 = arith.mulf %245, %14 : vector<32x1xf32>
    %247 = vector.broadcast %246 : vector<32x1xf32> to vector<32x128xf32>
    %248 = arith.mulf %242, %247 : vector<32x128xf32>
    %249 = vector.broadcast %15 : vector<32x1xf32> to vector<32x128xf32>
    %250 = arith.addf %248, %249 : vector<32x128xf32>
    %cst_93 = arith.constant 2.000000e+01 : f32
    %251 = vector.broadcast %cst_93 : f32 to vector<32x128xf32>
    %252 = arith.minimumf %250, %251 : vector<32x128xf32>
    %253 = math.exp %252 : vector<32x128xf32>
    %cst_94 = arith.constant 2.000000e+00 : f32
    %254 = vector.broadcast %cst_94 : f32 to vector<32x128xf32>
    %255 = arith.addf %253, %254 : vector<32x128xf32>
    %256 = arith.mulf %253, %255 : vector<32x128xf32>
    %cst_95 = arith.constant 2.000000e+00 : f32
    %257 = vector.broadcast %cst_95 : f32 to vector<32x128xf32>
    %258 = arith.addf %256, %257 : vector<32x128xf32>
    %259 = tpu.reciprocal %258 {approx = true} : vector<32x128xf32> -> vector<32x128xf32>
    %260 = arith.mulf %256, %259 : vector<32x128xf32>
    %cst_96 = arith.constant 2.000000e+01 : f32
    %261 = vector.broadcast %cst_96 : f32 to vector<32x128xf32>
    %262 = arith.cmpf ogt, %250, %261 : vector<32x128xf32>
    %263 = arith.mulf %250, %260 : vector<32x128xf32>
    %264 = arith.select %262, %250, %263 : vector<32x128xi1>, vector<32x128xf32>
    %265 = arith.addf %264, %206 : vector<32x128xf32>
    %266 = arith.truncf %265 : vector<32x128xf32> to vector<32x128xbf16>
    %c0_97 = arith.constant 0 : index
    %c0_98 = arith.constant 0 : index
    %267 = vector.load %arg7[%c0_97, %c0_98] : memref<128x128xbf16, #tpu.memory_space<vmem>>, vector<128x128xbf16>
    %cst_99 = arith.constant dense<0.000000e+00> : vector<32x128xf32>
    %268 = tpu.matmul %266, %267, %cst_99 {dimension_numbers = #tpu.dot_dimension_numbers<[1], [0], [0], [1], [0, 0, 1, 1], [], []>} : vector<32x128xbf16>, vector<128x128xbf16>, vector<32x128xf32> -> vector<32x128xf32>
    %269 = vector.extract_strided_slice %268 {offsets = [0, 0], sizes = [16, 128], strides = [1, 1]} : vector<32x128xf32> to vector<16x128xf32>
    %cst_100 = arith.constant dense<0.000000e+00> : vector<16x128xf32>
    %270 = tpu.matmul %13, %269, %cst_100 {dimension_numbers = #tpu.dot_dimension_numbers<[1], [0], [0], [1], [0, 0, 1, 1], [], []>} : vector<16x16xf32>, vector<16x128xf32>, vector<16x128xf32> -> vector<16x128xf32>
    %271 = vector.extract_strided_slice %268 {offsets = [16, 0], sizes = [16, 128], strides = [1, 1]} : vector<32x128xf32> to vector<16x128xf32>
    %cst_101 = arith.constant dense<0.000000e+00> : vector<16x128xf32>
    %272 = tpu.matmul %13, %271, %cst_101 {dimension_numbers = #tpu.dot_dimension_numbers<[1], [0], [0], [1], [0, 0, 1, 1], [], []>} : vector<16x16xf32>, vector<16x128xf32>, vector<16x128xf32> -> vector<16x128xf32>
    %273 = tpu.concatenate %270, %272 in 0 : vector<16x128xf32>, vector<16x128xf32> -> vector<32x128xf32>
    %274 = arith.addf %273, %268 : vector<32x128xf32>
    %c0_102 = arith.constant 0 : index
    %c0_103 = arith.constant 0 : index
    %275 = vector.load %arg8[%c0_102, %c0_103] : memref<1x128xf32, #tpu.memory_space<vmem>>, vector<1x128xf32>
    %276 = vector.broadcast %275 : vector<1x128xf32> to vector<32x128xf32>
    %277 = arith.addf %274, %276 : vector<32x128xf32>
    %cst_104 = arith.constant 0.000000e+00 : f32
    %278 = vector.broadcast %cst_104 : f32 to vector<32x128xf32>
    %279 = arith.cmpf oge, %277, %278 : vector<32x128xf32>
    %cst_105 = arith.constant 0.00999999977 : f32
    %280 = vector.broadcast %cst_105 : f32 to vector<32x128xf32>
    %281 = arith.mulf %280, %277 : vector<32x128xf32>
    %282 = arith.select %279, %277, %281 : vector<32x128xi1>, vector<32x128xf32>
    %283 = arith.mulf %282, %282 : vector<32x128xf32>
    %c16_i32_106 = arith.constant 16 : i32
    %284 = tpu.dynamic_rotate %282 by %c16_i32_106 dim 0 : vector<32x128xf32>, i32 -> vector<32x128xf32>
    %285 = arith.addf %282, %284 : vector<32x128xf32>
    %286 = arith.mulf %284, %284 : vector<32x128xf32>
    %287 = arith.addf %283, %286 : vector<32x128xf32>
    %cst_107 = arith.constant dense<0.000000e+00> : vector<32xf32>
    %288 = vector.multi_reduction <add>, %285, %cst_107 [1] : vector<32x128xf32> to vector<32xf32>
    %289 = vector.shape_cast %288 : vector<32xf32> to vector<32x1xf32>
    %cst_108 = arith.constant 3.906250e-03 : f32
    %290 = vector.broadcast %cst_108 : f32 to vector<32x1xf32>
    %291 = arith.mulf %289, %290 : vector<32x1xf32>
    %cst_109 = arith.constant dense<0.000000e+00> : vector<32xf32>
    %292 = vector.multi_reduction <add>, %287, %cst_109 [1] : vector<32x128xf32> to vector<32xf32>
    %293 = vector.shape_cast %292 : vector<32xf32> to vector<32x1xf32>
    %cst_110 = arith.constant 3.906250e-03 : f32
    %294 = vector.broadcast %cst_110 : f32 to vector<32x1xf32>
    %295 = arith.mulf %293, %294 : vector<32x1xf32>
    %296 = arith.mulf %291, %291 : vector<32x1xf32>
    %297 = arith.subf %295, %296 : vector<32x1xf32>
    %cst_111 = arith.constant 0.000000e+00 : f32
    %298 = vector.broadcast %cst_111 : f32 to vector<32x1xf32>
    %299 = arith.maximumf %297, %298 : vector<32x1xf32>
    %300 = vector.broadcast %291 : vector<32x1xf32> to vector<32x128xf32>
    %301 = arith.subf %282, %300 : vector<32x128xf32>
    %cst_112 = arith.constant 9.99999974E-6 : f32
    %302 = vector.broadcast %cst_112 : f32 to vector<32x1xf32>
    %303 = arith.addf %299, %302 : vector<32x1xf32>
    %304 = math.rsqrt %303 : vector<32x1xf32>
    %305 = arith.mulf %304, %14 : vector<32x1xf32>
    %306 = vector.broadcast %305 : vector<32x1xf32> to vector<32x128xf32>
    %307 = arith.mulf %301, %306 : vector<32x128xf32>
    %308 = vector.broadcast %15 : vector<32x1xf32> to vector<32x128xf32>
    %309 = arith.addf %307, %308 : vector<32x128xf32>
    %cst_113 = arith.constant 2.000000e+01 : f32
    %310 = vector.broadcast %cst_113 : f32 to vector<32x128xf32>
    %311 = arith.minimumf %309, %310 : vector<32x128xf32>
    %312 = math.exp %311 : vector<32x128xf32>
    %cst_114 = arith.constant 2.000000e+00 : f32
    %313 = vector.broadcast %cst_114 : f32 to vector<32x128xf32>
    %314 = arith.addf %312, %313 : vector<32x128xf32>
    %315 = arith.mulf %312, %314 : vector<32x128xf32>
    %cst_115 = arith.constant 2.000000e+00 : f32
    %316 = vector.broadcast %cst_115 : f32 to vector<32x128xf32>
    %317 = arith.addf %315, %316 : vector<32x128xf32>
    %318 = tpu.reciprocal %317 {approx = true} : vector<32x128xf32> -> vector<32x128xf32>
    %319 = arith.mulf %315, %318 : vector<32x128xf32>
    %cst_116 = arith.constant 2.000000e+01 : f32
    %320 = vector.broadcast %cst_116 : f32 to vector<32x128xf32>
    %321 = arith.cmpf ogt, %309, %320 : vector<32x128xf32>
    %322 = arith.mulf %309, %319 : vector<32x128xf32>
    %323 = arith.select %321, %309, %322 : vector<32x128xi1>, vector<32x128xf32>
    %324 = arith.addf %323, %265 : vector<32x128xf32>
    %325 = arith.truncf %324 : vector<32x128xf32> to vector<32x128xbf16>
    %c0_117 = arith.constant 0 : index
    %c0_118 = arith.constant 0 : index
    %326 = vector.load %arg9[%c0_117, %c0_118] : memref<128x128xbf16, #tpu.memory_space<vmem>>, vector<128x128xbf16>
    %cst_119 = arith.constant dense<0.000000e+00> : vector<32x128xf32>
    %327 = tpu.matmul %325, %326, %cst_119 {dimension_numbers = #tpu.dot_dimension_numbers<[1], [0], [0], [1], [0, 0, 1, 1], [], []>} : vector<32x128xbf16>, vector<128x128xbf16>, vector<32x128xf32> -> vector<32x128xf32>
    %328 = vector.extract_strided_slice %327 {offsets = [0, 0], sizes = [16, 128], strides = [1, 1]} : vector<32x128xf32> to vector<16x128xf32>
    %cst_120 = arith.constant dense<0.000000e+00> : vector<16x128xf32>
    %329 = tpu.matmul %13, %328, %cst_120 {dimension_numbers = #tpu.dot_dimension_numbers<[1], [0], [0], [1], [0, 0, 1, 1], [], []>} : vector<16x16xf32>, vector<16x128xf32>, vector<16x128xf32> -> vector<16x128xf32>
    %330 = vector.extract_strided_slice %327 {offsets = [16, 0], sizes = [16, 128], strides = [1, 1]} : vector<32x128xf32> to vector<16x128xf32>
    %cst_121 = arith.constant dense<0.000000e+00> : vector<16x128xf32>
    %331 = tpu.matmul %13, %330, %cst_121 {dimension_numbers = #tpu.dot_dimension_numbers<[1], [0], [0], [1], [0, 0, 1, 1], [], []>} : vector<16x16xf32>, vector<16x128xf32>, vector<16x128xf32> -> vector<16x128xf32>
    %332 = tpu.concatenate %329, %331 in 0 : vector<16x128xf32>, vector<16x128xf32> -> vector<32x128xf32>
    %333 = arith.addf %332, %327 : vector<32x128xf32>
    %c0_122 = arith.constant 0 : index
    %c0_123 = arith.constant 0 : index
    %334 = vector.load %arg10[%c0_122, %c0_123] : memref<1x128xf32, #tpu.memory_space<vmem>>, vector<1x128xf32>
    %335 = vector.broadcast %334 : vector<1x128xf32> to vector<32x128xf32>
    %336 = arith.addf %333, %335 : vector<32x128xf32>
    %cst_124 = arith.constant 0.000000e+00 : f32
    %337 = vector.broadcast %cst_124 : f32 to vector<32x128xf32>
    %338 = arith.cmpf oge, %336, %337 : vector<32x128xf32>
    %cst_125 = arith.constant 0.00999999977 : f32
    %339 = vector.broadcast %cst_125 : f32 to vector<32x128xf32>
    %340 = arith.mulf %339, %336 : vector<32x128xf32>
    %341 = arith.select %338, %336, %340 : vector<32x128xi1>, vector<32x128xf32>
    %342 = arith.mulf %341, %341 : vector<32x128xf32>
    %c16_i32_126 = arith.constant 16 : i32
    %343 = tpu.dynamic_rotate %341 by %c16_i32_126 dim 0 : vector<32x128xf32>, i32 -> vector<32x128xf32>
    %344 = arith.addf %341, %343 : vector<32x128xf32>
    %345 = arith.mulf %343, %343 : vector<32x128xf32>
    %346 = arith.addf %342, %345 : vector<32x128xf32>
    %cst_127 = arith.constant dense<0.000000e+00> : vector<32xf32>
    %347 = vector.multi_reduction <add>, %344, %cst_127 [1] : vector<32x128xf32> to vector<32xf32>
    %348 = vector.shape_cast %347 : vector<32xf32> to vector<32x1xf32>
    %cst_128 = arith.constant 3.906250e-03 : f32
    %349 = vector.broadcast %cst_128 : f32 to vector<32x1xf32>
    %350 = arith.mulf %348, %349 : vector<32x1xf32>
    %cst_129 = arith.constant dense<0.000000e+00> : vector<32xf32>
    %351 = vector.multi_reduction <add>, %346, %cst_129 [1] : vector<32x128xf32> to vector<32xf32>
    %352 = vector.shape_cast %351 : vector<32xf32> to vector<32x1xf32>
    %cst_130 = arith.constant 3.906250e-03 : f32
    %353 = vector.broadcast %cst_130 : f32 to vector<32x1xf32>
    %354 = arith.mulf %352, %353 : vector<32x1xf32>
    %355 = arith.mulf %350, %350 : vector<32x1xf32>
    %356 = arith.subf %354, %355 : vector<32x1xf32>
    %cst_131 = arith.constant 0.000000e+00 : f32
    %357 = vector.broadcast %cst_131 : f32 to vector<32x1xf32>
    %358 = arith.maximumf %356, %357 : vector<32x1xf32>
    %359 = vector.broadcast %350 : vector<32x1xf32> to vector<32x128xf32>
    %360 = arith.subf %341, %359 : vector<32x128xf32>
    %cst_132 = arith.constant 9.99999974E-6 : f32
    %361 = vector.broadcast %cst_132 : f32 to vector<32x1xf32>
    %362 = arith.addf %358, %361 : vector<32x1xf32>
    %363 = math.rsqrt %362 : vector<32x1xf32>
    %364 = arith.mulf %363, %14 : vector<32x1xf32>
    %365 = vector.broadcast %364 : vector<32x1xf32> to vector<32x128xf32>
    %366 = arith.mulf %360, %365 : vector<32x128xf32>
    %367 = vector.broadcast %15 : vector<32x1xf32> to vector<32x128xf32>
    %368 = arith.addf %366, %367 : vector<32x128xf32>
    %cst_133 = arith.constant 2.000000e+01 : f32
    %369 = vector.broadcast %cst_133 : f32 to vector<32x128xf32>
    %370 = arith.minimumf %368, %369 : vector<32x128xf32>
    %371 = math.exp %370 : vector<32x128xf32>
    %cst_134 = arith.constant 2.000000e+00 : f32
    %372 = vector.broadcast %cst_134 : f32 to vector<32x128xf32>
    %373 = arith.addf %371, %372 : vector<32x128xf32>
    %374 = arith.mulf %371, %373 : vector<32x128xf32>
    %cst_135 = arith.constant 2.000000e+00 : f32
    %375 = vector.broadcast %cst_135 : f32 to vector<32x128xf32>
    %376 = arith.addf %374, %375 : vector<32x128xf32>
    %377 = tpu.reciprocal %376 {approx = true} : vector<32x128xf32> -> vector<32x128xf32>
    %378 = arith.mulf %374, %377 : vector<32x128xf32>
    %cst_136 = arith.constant 2.000000e+01 : f32
    %379 = vector.broadcast %cst_136 : f32 to vector<32x128xf32>
    %380 = arith.cmpf ogt, %368, %379 : vector<32x128xf32>
    %381 = arith.mulf %368, %378 : vector<32x128xf32>
    %382 = arith.select %380, %368, %381 : vector<32x128xi1>, vector<32x128xf32>
    %383 = arith.addf %382, %324 : vector<32x128xf32>
    %384 = arith.truncf %383 : vector<32x128xf32> to vector<32x128xbf16>
    %c0_137 = arith.constant 0 : index
    %c0_138 = arith.constant 0 : index
    %385 = vector.load %arg13[%c0_137, %c0_138] : memref<128x32xbf16, #tpu.memory_space<vmem>>, vector<128x32xbf16>
    %cst_139 = arith.constant dense<0.000000e+00> : vector<32x32xf32>
    %386 = tpu.matmul %384, %385, %cst_139 {dimension_numbers = #tpu.dot_dimension_numbers<[1], [0], [0], [1], [0, 0, 1, 1], [], []>} : vector<32x128xbf16>, vector<128x32xbf16>, vector<32x32xf32> -> vector<32x32xf32>
    %c0_140 = arith.constant 0 : index
    %c0_141 = arith.constant 0 : index
    %387 = vector.load %arg14[%c0_140, %c0_141] : memref<1x32xf32, #tpu.memory_space<vmem>>, vector<1x32xf32>
    %388 = vector.broadcast %387 : vector<1x32xf32> to vector<32x32xf32>
    %389 = arith.addf %386, %388 : vector<32x32xf32>
    %cst_142 = arith.constant 0.000000e+00 : f32
    %390 = vector.broadcast %cst_142 : f32 to vector<32x32xf32>
    %391 = arith.maximumf %389, %390 : vector<32x32xf32>
    %392 = arith.truncf %391 : vector<32x32xf32> to vector<32x32xbf16>
    %c0_143 = arith.constant 0 : index
    %c0_144 = arith.constant 0 : index
    %393 = vector.load %arg15[%c0_143, %c0_144] : memref<32x128xbf16, #tpu.memory_space<vmem>>, vector<32x128xbf16>
    %cst_145 = arith.constant dense<0.000000e+00> : vector<32x128xf32>
    %394 = tpu.matmul %392, %393, %cst_145 {dimension_numbers = #tpu.dot_dimension_numbers<[1], [0], [0], [1], [0, 0, 1, 1], [], []>} : vector<32x32xbf16>, vector<32x128xbf16>, vector<32x128xf32> -> vector<32x128xf32>
    %c0_146 = arith.constant 0 : index
    %c0_147 = arith.constant 0 : index
    %395 = vector.load %arg16[%c0_146, %c0_147] : memref<1x128xf32, #tpu.memory_space<vmem>>, vector<1x128xf32>
    %396 = vector.broadcast %395 : vector<1x128xf32> to vector<32x128xf32>
    %397 = arith.addf %394, %396 : vector<32x128xf32>
    %cst_148 = arith.constant -6.000000e+01 : f32
    %398 = vector.broadcast %cst_148 : f32 to vector<32x128xf32>
    %399 = arith.maximumf %397, %398 : vector<32x128xf32>
    %cst_149 = arith.constant 0.000000e+00 : f32
    %400 = vector.broadcast %cst_149 : f32 to vector<32x128xf32>
    %401 = arith.subf %400, %399 : vector<32x128xf32>
    %402 = math.exp %401 : vector<32x128xf32>
    %cst_150 = arith.constant 1.000000e+00 : f32
    %403 = vector.broadcast %cst_150 : f32 to vector<32x128xf32>
    %404 = arith.addf %403, %402 : vector<32x128xf32>
    %405 = tpu.reciprocal %404 {approx = true} : vector<32x128xf32> -> vector<32x128xf32>
    %c0_151 = arith.constant 0 : index
    %c0_152 = arith.constant 0 : index
    %406 = vector.load %arg17[%c0_151, %c0_152] : memref<32x128xf32, #tpu.memory_space<vmem>>, vector<32x128xf32>
    tpu.vector_store %arg17[%c0_151, %c0_152], %405 {strides = array<i32>} : memref<32x128xf32, #tpu.memory_space<vmem>>, vector<32x128xf32>,
    return
  }
}

</mosaic_0001>

<bundles_post_ra>
// kernel: squeeze.1
= control target key start
LH: loop header
LB: loop body
LE: loop exit
PB: predicated region body
PF: predicated region fallthrough
CT: control target
= control target key end

     0   :  { %s80_s0 = inlined_call_operand.vmem [shape: f32[32], index: 0, kind: input, shape index: {}]   ;;  %s81_s1 = inlined_call_operand.hbm [shape: f32[2,16], index: 1, kind: output, shape index: {}]  }
   0x1   :  { %v5_v0 = vld [vmem:[%s80_s0] sm:$0x1] }
   0x2   :  { %2 = vsyncpa [#allocation1], 0  ;;  %6 = vst [vmem:[#allocation3] sm:$0x1] %v5_v0  ;;  %vm8_vm0 = vcmask 130048   ;;  %s62_s0 = smov 112  }
   0x3   :  { %s63_s8 = smov [#allocation0]   ;;  %s27_s1 = sshll.u32 %s81_s1, 4  ;;  %s28_s1 = int_to_ptr.hbm [resolvable:$true] %s27_s1 }
   0x4   :  { %s25_s9 = sshll.u32 %s63_s8, 4  ;;  %s26_s9 = int_to_ptr.vmem [resolvable:$true] %s25_s9 }
   0x9   :  { %v10_v1 = vld [vmem:[#allocation3] sm:$0x1]  }
   0xa   :  { %v7_v2 = vld [vmem:[#allocation3] sm:$0x1]   ;;  %11 = vrot.lane.b32.xlu0 %v10_v1, %s62_s0 }
   0xb   :  { %9 = vst.msk [vmem:[#allocation2] sm:$0x1] %vm8_vm0, %v7_v2  }
  0x7c   :  { %v12_v3 = vpop.permute.xlu0 %11  }
  0x7d   :  { %15 = vst.msk [vmem:[#allocation2 + $0x1] sm:$0x1] %vm8_vm0, %v12_v3  }
  0x84   :  { %v18_v4 = vld [vmem:[#allocation2] sm:$0x3] }
  0x85   :  { %21 = vst [vmem:[#allocation0] sm:$0x3] %v18_v4 }
  0x86   :  { %30 = dma.vmem_to_hbm [thread:$0]  %s26_s9, 32, %s28_s1, [#allocation1]  }
  0x87   :  { %60 = dma.done.wait [#allocation1], 32  }
  0x88   :  { %61 = vsyncadd [#allocation1], 4294967264 }
  0x89   :  { %33 = vsyncpa [#allocation1], 1 }

// kernel: gcnb_forward.1
= control target key start
LH: loop header
LB: loop body
LE: loop exit
PB: predicated region body
PF: predicated region fallthrough
CT: control target
= control target key end

     0   :  { %s3110_s0 = inlined_call_operand.vmem [shape: f32[16,16], index: 0, kind: input, shape index: {}]   ;;  %s3111_s1 = inlined_call_operand.vmem [shape: bf16[32,16], index: 1, kind: input, shape index: {}]   ;;  %s3112_s2 = inlined_call_operand.vmem [shape: f32[1,128], index: 2, kind: input, shape index: {}]   ;;  %s3113_s3 = inlined_call_operand.vmem [shape: bf16[16,128], index: 3, kind: input, shape index: {}]   ;;  %s3114_s4 = inlined_call_operand.vmem [shape: f32[1,128], index: 4, kind: input, shape index: {}]   ;;  %s3115_s5 = inlined_call_operand.vmem [shape: bf16[128,128], index: 5, kind: input, shape index: {}]   ;;  %s3116_s6 = inlined_call_operand.vmem [shape: f32[1,128], index: 6, kind: input, shape index: {}]   ;;  %s3117_s7 = inlined_call_operand.vmem [shape: bf16[128,128], index: 7, kind: input, shape index: {}]   ;;  %s3118_s8 = inlined_call_operand.vmem [shape: f32[1,128], index: 8, kind: input, shape index: {}]   ;;  %s3119_s9 = inlined_call_operand.hbm [shape: bf16[128,128], index: 9, kind: input, shape index: {}]   ;;  %s3120_s10 = inlined_call_operand.vmem [shape: f32[1,128], index: 10, kind: input, shape index: {}]   ;;  %s3121_s11 = inlined_call_operand.vmem [shape: f32[32,1], index: 11, kind: input, shape index: {}]   ;;  %s3122_s12 = inlined_call_operand.vmem [shape: f32[32,1], index: 12, kind: input, shape index: {}]   ;;  %s3123_s13 = inlined_call_operand.vmem [shape: bf16[128,32], index: 13, kind: input, shape index: {}]   ;;  %s3124_s14 = inlined_call_operand.vmem [shape: f32[1,32], index: 14, kind: input, shape index: {}]   ;;  %s3125_s15 = inlined_call_operand.vmem [shape: bf16[32,128], index: 15, kind: input, shape index: {}]   ;;  %s3126_s16 = inlined_call_operand.vmem [shape: f32[1,128], index: 16, kind: input, shape index: {}]   ;;  %s3127_s17 = inlined_call_operand.vmem [shape: f32[32,128], index: 17, kind: output, shape index: {}]  }
   0x1   :  { %3130 = sst [smem:[#allocation5_spill]] %s3110_s0 }
   0x2   :  { %3131 = sst [smem:[#allocation6_spill]] %s3111_s1 }
   0x3   :  { %22 = vsyncpa [#allocation3], 0  ;;  %s45_s26 = sshll.u32 %s3119_s9, 4  ;;  %s2343_s27 = smov [#allocation2]   ;;  %s46_s26 = int_to_ptr.hbm [resolvable:$true] %s45_s26 }
   0x4   :  { %s47_s28 = sshll.u32 %s2343_s27, 4  ;;  %s2344_s29 = smov 64   ;;  %s48_s28 = int_to_ptr.vmem [resolvable:$true] %s47_s28 }
   0x5   :  { %s2345_s0 = smov 4  }
   0x6   :  { %53 = dma.hbm_to_vmem [thread:$0]  %s46_s26, 1024, %s48_s28, [#allocation3], %s2344_s29, %s2344_s29, %s2345_s0  }
   0x7   :  { %2341 = dma.done.wait [#allocation3], 1024  }
   0x8   :  { %2342 = vsyncadd [#allocation3], 4294966272  ;;  %vm75_vm0 = vcmask 130048   ;;  %s3132_s19 = sld [smem:[#allocation5_spill]]  ;;  %v2121_v1 = vld [vmem:[%s3113_s3] sm:$0xff]  ;;  %v102_v8 = vlaneseq  ;;  %v2129_v26 = vld [vmem:[%s3115_s5 + $0x38] sm:$0xff] }
   0x9   :  { %s3133_s22 = sld [smem:[#allocation6_spill]]  ;;  %189 = vmatpush.bf16.msra.mxu1 %v2121_v1  ;;  %v2128_v30 = vld [vmem:[%s3115_s5 + $0x30] sm:$0xff]  ;;  %v2127_v31 = vld [vmem:[%s3115_s5 + $0x28] sm:$0xff]  ;;  %v2126_v34 = vld [vmem:[%s3115_s5 + $0x20] sm:$0xff] }
   0xa   :  { %v103_v12 = vshrl.u32 %v102_v8, 7  ;;  %v106_v16 = vand.u32 127, %v102_v8  ;;  %v2165_v35 = vld [vmem:[%s3114_s4] ss:$0 sm:$0xff]  ;;  %v2125_v36 = vld [vmem:[%s3115_s5 + $0x18] sm:$0xff]  ;;  %v2124_v39 = vld [vmem:[%s3115_s5 + $0x10] sm:$0xff] }
   0xb   :  { %v2123_v43 = vld [vmem:[%s3115_s5 + $0x8] sm:$0xff]  ;;  %v2166_v44 = vld [vmem:[%s3112_s2] ss:$0 sm:$0xff] }
   0xc   :  { %v104_v15 = vadd.s32 8, %v103_v12  ;;  %vm107_vm7 = vcmp.eq.s32.totalorder %v103_v12, %v106_v16  ;;  %v2122_v47 = vld [vmem:[%s3115_s5] sm:$0xff] }
   0xe   :  { %v74_v0 = vld [vmem:[%s3132_s19 + $0x8] sm:$0xff]  ;;  %v73_v4 = vld [vmem:[%s3132_s19] sm:$0xff]  ;;  %vm108_vm3 = vcmp.eq.s32.totalorder %v104_v15, %v106_v16 }
   0xf   :  { %v79_v2 = vsel %vm75_vm0, %v74_v0, 0.0  ;;  %v2119_v3 = vld [vmem:[%s3133_s22] sm:$0xff]  ;;  %v76_v5 = vsel %vm75_vm0, %v73_v4, 0.0  ;;  %v2120_v6 = vld [vmem:[%s3133_s22 + $0x8] sm:$0xff] }
  0x10   :  { %80 = vadd.xlane.f32.xlu0 %v79_v2  ;;  %1955 = vmatmul.msk.bf16.vlgmr.msra.gmra.mxu1 %vm75_vm0, %v2119_v3 }
  0x18   :  { %77 = vadd.xlane.f32.xlu0 %v76_v5  ;;  %v2167_v5 = vld [vmem:[%s3116_s6] ss:$0 sm:$0xff] }
  0x20   :  { %1956 = vmatmul.msk.bf16.gmra.mxu1 %vm75_vm0, %v2120_v6 }
  0x83   :  { %v81_v7 = vpop.xlane.xlu0 %80 }
  0x84   :  { %2172 = vrsqrt.f32 %v81_v7  ;;  %vm98_vm2 = vweird.f32 %v81_v7 }
  0x8a   :  { %v2173_v9 = vpop.eup %2172 }
  0x8b   :  { %v93_v10 = vmul.f32 %v2173_v9, %v81_v7  ;;  %v78_v11 = vpop.xlane.xlu0 %77  ;;  %vm99_vm1 = vweird.f32 %v2173_v9 }
  0x8c   :  { %2174 = vrsqrt.f32 %v78_v11  ;;  %vm100_vm4 = vmor %vm98_vm2, %vm99_vm1  ;;  %vm88_vm6 = vweird.f32 %v78_v11 }
  0x8d   :  { %v94_v13 = vmul.f32 %v2173_v9, %v93_v10  ;;  %v191_v27 = vpop.f32.mrf.mxu1 }
  0x8e   :  { %v192_v37 = vadd.f32 %v2165_v35, %v191_v27 }
  0x8f   :  { %v95_v14 = vmul.f32 0.5, %v94_v13 }
  0x90   :  { %v205_v41 = vmul.f32 0.01, %v192_v37  ;;  %vm201_vm9 = vcmp.ge.f32.partialorder %v192_v37, 0.0 }
  0x91   :  { %v96_v17 = vsub.f32 1.5, %v95_v14 }
  0x92   :  { %v2175_v18 = vpop.eup %2174  ;;  %v209_v45 = vsel %vm201_vm9, %v192_v37, %v205_v41 }
  0x93   :  { %v83_v19 = vmul.f32 %v2175_v18, %v78_v11  ;;  %v97_v20 = vmul.f32 %v2173_v9, %v96_v17  ;;  %vm89_vm5 = vweird.f32 %v2175_v18  ;;  %v2491_v48 = vadd.f32 %v2166_v44, %v209_v45 }
  0x94   :  { %vm90_vm8 = vmor %vm88_vm6, %vm89_vm5 }
  0x95   :  { %v84_v21 = vmul.f32 %v2175_v18, %v83_v19  ;;  %v101_v22 = vsel %vm100_vm4, %v2173_v9, %v97_v20  ;;  %v193_v33 = vpop.f32.mrf.mxu1 }
  0x96   :  { %1939 = vmatpush.msk.msra.mxu2 %vm108_vm3, %v101_v22  ;;  %v112_v32 = vmul.f32 %v101_v22, %v74_v0  ;;  %v194_v38 = vadd.f32 %v2165_v35, %v193_v33  ;;  %v146_v33 = vld [vmem:[%s3122_s12] sm:$0xff] }
  0x97   :  { %v85_v23 = vmul.f32 0.5, %v84_v21 }
  0x98   :  { %v206_v42 = vmul.f32 0.01, %v194_v38  ;;  %vm202_vm10 = vcmp.ge.f32.partialorder %v194_v38, 0.0 }
  0x99   :  { %v86_v24 = vsub.f32 1.5, %v85_v23 }
  0x9a   :  { %v210_v46 = vsel %vm202_vm10, %v194_v38, %v206_v42 }
  0x9b   :  { %v87_v25 = vmul.f32 %v2175_v18, %v86_v24  ;;  %v2493_v49 = vadd.f32 %v2166_v44, %v210_v46 }
  0x9d   :  { %v91_v28 = vsel %vm90_vm8, %v2175_v18, %v87_v25  ;;  %v196_v40 = vpop.f32.mrf.mxu1  ;;  %v221_v51 = vpack.c.bf16 %v2493_v49, %v2491_v48 }
  0x9e   :  { %v111_v29 = vmul.f32 %v91_v28, %v73_v4  ;;  %1940 = vmatpush.msk.msra.mxu2 %vm107_vm7, %v91_v28  ;;  %v197_v52 = vadd.f32 %v2165_v35, %v196_v40 }
  0xa0   :  { %287 = vmatpush.bf16.msrb.mxu2 %v2129_v26  ;;  %v207_v54 = vmul.f32 0.01, %v197_v52  ;;  %vm203_vm11 = vcmp.ge.f32.partialorder %v197_v52, 0.0 }
  0xa1   :  { %1941 = vmatmul.msk.f32.vlgmr.msra.gmra.mxu2 %vm75_vm0, %v111_v29 }
  0xa2   :  { %v211_v56 = vsel %vm203_vm11, %v197_v52, %v207_v54 }
  0xa3   :  { %v2497_v58 = vadd.f32 %v2166_v44, %v211_v56 }
  0xa4   :  { %288 = vmatpush.bf16.msrb.mxu2 %v2128_v30 }
  0xa5   :  { %v198_v50 = vpop.f32.mrf.mxu1 }
  0xa6   :  { %v199_v53 = vadd.f32 %v2165_v35, %v198_v50 }
  0xa8   :  { %289 = vmatpush.bf16.msrb.mxu2 %v2127_v31  ;;  %v208_v55 = vmul.f32 0.01, %v199_v53  ;;  %vm204_vm12 = vcmp.ge.f32.partialorder %v199_v53, 0.0 }
  0xa9   :  { %1942 = vmatmul.msk.f32.gmra.mxu2 %vm75_vm0, %v112_v32  ;;  %v2346_v32 = vmov 0  }
  0xaa   :  { %v212_v57 = vsel %vm204_vm12, %v199_v53, %v208_v55  ;;  %2164 = vset.pattern.permute.xlu2 %v2346_v32  ;;  %2162 = vset.pattern.permute.xlu0 %v2346_v32 }
  0xab   :  { %v2499_v59 = vadd.f32 %v2166_v44, %v212_v57  ;;  %2163 = vset.pattern.permute.xlu1 %v2346_v32 }
  0xac   :  { %290 = vmatpush.bf16.msrb.mxu2 %v2126_v34  ;;  %v147_v34 = vld [vmem:[%s3122_s12 + $0x8] sm:$0xff] }
  0xad   :  { %v222_v60 = vpack.c.bf16 %v2499_v59, %v2497_v58 }
  0xb0   :  { %291 = vmatpush.bf16.msrb.mxu2 %v2125_v36 }
  0xb4   :  { %292 = vmatpush.bf16.msrb.mxu2 %v2124_v39 }
  0xb8   :  { %293 = vmatpush.bf16.msrb.mxu2 %v2123_v43 }
  0xbc   :  { %294 = vmatpush.bf16.msrb.mxu2 %v2122_v47 }
  0xbf   :  { %295 = vmatmul.bf16.vlgmr.msrb.gmra.mxu2 %v221_v51 }
  0xcf   :  { %300 = vmatmul.bf16.gmra.mxu2 %v222_v60 }
 0x124   :  { %v2503_v61 = vpop.f32.mrf.mxu2 }
 0x12c   :  { %v2505_v62 = vpop.f32.mrf.mxu2 }
 0x142   :  { %v296_v63 = vpop.f32.mrf.mxu2 }
 0x14a   :  { %v298_v0 = vpop.f32.mrf.mxu2 }
 0x14b   :  { %326 = vmatpush.msra.mxu0 %v298_v0  ;;  %2156 = vmatpush.msra.mxu3 %v298_v0 }
 0x14d   :  { %327 = vmatpush.msra.mxu0 %v296_v63  ;;  %2157 = vmatpush.msra.mxu3 %v296_v63 }
 0x14e   :  { %1989 = vmatmul.msk.f32.vlgmr.msra.gmra.mxu0 %vm75_vm0, %v2503_v61  ;;  %1990 = vmatmul.msk.f32.vlgmr.msra.gmra.mxu3 %vm75_vm0, %v2505_v62 }
 0x152   :  { %v301_v1 = vpop.f32.mrf.mxu2 }
 0x15a   :  { %v303_v2 = vpop.f32.mrf.mxu2 }
 0x15b   :  { %349 = vmatpush.msrb.mxu0 %v303_v2 }
 0x15d   :  { %350 = vmatpush.msrb.mxu0 %v301_v1 }
 0x15e   :  { %1991 = vmatmul.msk.f32.vlgmr.msrb.gmra.mxu0 %vm75_vm0, %v2503_v61 }
 0x166   :  { %1992 = vmatmul.msk.f32.gmra.mxu0 %vm75_vm0, %v2505_v62 }
 0x1cb   :  { %v329_v3 = vpop.f32.mrf.mxu0 }
 0x1cc   :  { %v358_v4 = vadd.f32 %v329_v3, %v296_v63 }
 0x1ce   :  { %v366_v6 = vadd.f32 %v2167_v5, %v358_v4 }
 0x1d0   :  { %v374_v11 = vmul.f32 0.01, %v366_v6  ;;  %vm370_vm13 = vcmp.ge.f32.partialorder %v366_v6, 0.0 }
 0x1d1   :  { %v332_v7 = vpop.f32.mrf.mxu3 }
 0x1d2   :  { %v359_v9 = vadd.f32 %v332_v7, %v298_v0  ;;  %v2518_v15 = vsel %vm370_vm13, %v366_v6, %v374_v11  ;;  %v2555_v0 = vld [vmem:[%s3121_s11] sm:$0xff]  ;;  %v2561_v7 = vld [vmem:[%s3121_s11 + $0x18] sm:$0xff] }
 0x1d3   :  { %v382_v19 = vmul.f32 %v2518_v15, %v2518_v15 }
 0x1d4   :  { %v367_v13 = vadd.f32 %v2167_v5, %v359_v9  ;;  %v2566_v9 = vld [vmem:[%s3121_s11 + $0x8] sm:$0xff] }
 0x1d6   :  { %v375_v21 = vmul.f32 0.01, %v367_v13  ;;  %vm371_vm15 = vcmp.ge.f32.partialorder %v367_v13, 0.0 }
 0x1d8   :  { %v2528_v26 = vsel %vm371_vm15, %v367_v13, %v375_v21  ;;  %v2593_v21 = vld [vmem:[%s3117_s7 + $0x30] sm:$0xff] }
 0x1d9   :  { %v383_v29 = vmul.f32 %v2528_v26, %v2528_v26 }
 0x1db   :  { %v352_v8 = vpop.f32.mrf.mxu0 }
 0x1dc   :  { %v360_v10 = vadd.f32 %v352_v8, %v301_v1 }
 0x1de   :  { %v368_v12 = vadd.f32 %v2167_v5, %v360_v10  ;;  %v149_v10 = vld [vmem:[%s3122_s12 + $0x18] sm:$0xff] }
 0x1e0   :  { %vm372_vm14 = vcmp.ge.f32.partialorder %v368_v12, 0.0  ;;  %v376_v14 = vmul.f32 0.01, %v368_v12 }
 0x1e2   :  { %v2520_v16 = vsel %vm372_vm14, %v368_v12, %v376_v14  ;;  %v2576_v14 = vld [vmem:[%s3121_s11 + $0x10] sm:$0xff] }
 0x1e3   :  { %v355_v17 = vpop.f32.mrf.mxu0  ;;  %v386_v18 = vadd.f32 %v2520_v16, %v2518_v15  ;;  %v384_v20 = vmul.f32 %v2520_v16, %v2520_v16 }
 0x1e4   :  { %v361_v22 = vadd.f32 %v355_v17, %v303_v2 }
 0x1e5   :  { %390 = vadd.xlane.f32.xlu1 %v386_v18  ;;  %v388_v23 = vadd.f32 %v384_v20, %v382_v19  ;;  %v148_v18 = vld [vmem:[%s3122_s12 + $0x10] sm:$0xff]  ;;  %v2585_v19 = vld [vmem:[%s3117_s7 + $0x38] sm:$0xff] }
 0x1e6   :  { %v369_v24 = vadd.f32 %v2167_v5, %v361_v22  ;;  %600 = vmatpush.bf16.msrb.mxu1 %v2585_v19  ;;  %v2599_v22 = vld [vmem:[%s3117_s7 + $0x28] sm:$0xff] }
 0x1e7   :  { %396 = vadd.xlane.f32.xlu2 %v388_v23 }
 0x1e8   :  { %v377_v25 = vmul.f32 0.01, %v369_v24  ;;  %vm373_vm1 = vcmp.ge.f32.partialorder %v369_v24, 0.0 }
 0x1ea   :  { %v2530_v27 = vsel %vm373_vm1, %v369_v24, %v377_v25  ;;  %601 = vmatpush.bf16.msrb.mxu1 %v2593_v21  ;;  %v2607_v24 = vld [vmem:[%s3117_s7 + $0x20] sm:$0xff]  ;;  %v2613_v25 = vld [vmem:[%s3117_s7 + $0x18] sm:$0xff] }
 0x1eb   :  { %v387_v28 = vadd.f32 %v2530_v27, %v2528_v26  ;;  %v385_v30 = vmul.f32 %v2530_v27, %v2530_v27 }
 0x1ed   :  { %392 = vadd.xlane.f32.xlu1 %v387_v28  ;;  %v389_v31 = vadd.f32 %v385_v30, %v383_v29 }
 0x1ee   :  { %602 = vmatpush.bf16.msrb.mxu1 %v2599_v22 }
 0x1ef   :  { %398 = vadd.xlane.f32.xlu2 %v389_v31  ;;  %v2621_v31 = vld [vmem:[%s3117_s7 + $0x10] sm:$0xff] }
 0x1f2   :  { %603 = vmatpush.bf16.msrb.mxu1 %v2607_v24 }
 0x1f6   :  { %604 = vmatpush.bf16.msrb.mxu1 %v2613_v25 }
 0x1fa   :  { %605 = vmatpush.bf16.msrb.mxu1 %v2621_v31 }
 0x207   :  { %464 = vperm.xlu2 %2164, %v146_v33  }
 0x20f   :  { %469 = vperm.xlu2 %2164, %v147_v34  }
 0x258   :  { %v391_v35 = vpop.xlane.xlu1 %390 }
 0x259   :  { %v2544_v36 = vmul.f32 0.00390625, %v391_v35  ;;  %v2633_v35 = vld [vmem:[%s3117_s7 + $0x8] sm:$0xff] }
 0x25a   :  { %v397_v37 = vpop.xlane.xlu2 %396  ;;  %606 = vmatpush.bf16.msrb.mxu1 %v2633_v35 }
 0x25b   :  { %v402_v38 = vmul.f32 %v2544_v36, %v2544_v36  ;;  %v400_v39 = vmul.f32 0.00390625, %v397_v37  ;;  %v408_v28 = vsub.f32 %v2518_v15, %v2544_v36 }
 0x25d   :  { %v404_v40 = vsub.f32 %v400_v39, %v402_v38 }
 0x25f   :  { %v406_v41 = vmax.f32 %v404_v40, 0.0 }
 0x260   :  { %v393_v42 = vpop.xlane.xlu1 %392 }
 0x261   :  { %v412_v43 = vadd.f32 1e-05, %v406_v41  ;;  %v2548_v44 = vmul.f32 0.00390625, %v393_v42 }
 0x262   :  { %v399_v45 = vpop.xlane.xlu2 %398 }
 0x263   :  { %2176 = vrsqrt.f32 %v412_v43  ;;  %v403_v46 = vmul.f32 %v2548_v44, %v2548_v44  ;;  %v401_v47 = vmul.f32 0.00390625, %v399_v45  ;;  %vm420_vm3 = vweird.f32 %v412_v43 }
 0x264   :  { %v411_v34 = vsub.f32 %v2530_v27, %v2548_v44  ;;  %v409_v40 = vsub.f32 %v2528_v26, %v2548_v44  ;;  %v2643_v27 = vld [vmem:[%s3117_s7] sm:$0xff] }
 0x265   :  { %v405_v50 = vsub.f32 %v401_v47, %v403_v46  ;;  %607 = vmatpush.bf16.msrb.mxu1 %v2643_v27 }
 0x267   :  { %v407_v51 = vmax.f32 %v405_v50, 0.0 }
 0x269   :  { %v2177_v52 = vpop.eup %2176  ;;  %v413_v53 = vadd.f32 1e-05, %v407_v51  ;;  %1042 = vmatpush.bf16.msra.mxu1 %v2585_v19 }
 0x26a   :  { %v415_v54 = vmul.f32 %v2177_v52, %v412_v43  ;;  %vm421_vm2 = vweird.f32 %v2177_v52  ;;  %v2587_v20 = vpop.permute.xlu2 %464 }
 0x26b   :  { %2178 = vrsqrt.f32 %v413_v53  ;;  %vm422_vm4 = vmor %vm420_vm3, %vm421_vm2  ;;  %vm430_vm6 = vweird.f32 %v413_v53 }
 0x26c   :  { %v416_v55 = vmul.f32 %v2177_v52, %v415_v54 }
 0x26d   :  { %1043 = vmatpush.bf16.msra.mxu1 %v2593_v21 }
 0x26e   :  { %v417_v56 = vmul.f32 0.5, %v416_v55  ;;  %v410_v55 = vsub.f32 %v2520_v16, %v2544_v36 }
 0x270   :  { %v418_v57 = vsub.f32 1.5, %v417_v56 }
 0x271   :  { %v2179_v60 = vpop.eup %2178  ;;  %1044 = vmatpush.bf16.msra.mxu1 %v2599_v22 }
 0x272   :  { %v425_v63 = vmul.f32 %v2179_v60, %v413_v53  ;;  %v419_v1 = vmul.f32 %v2177_v52, %v418_v57  ;;  %vm431_vm5 = vweird.f32 %v2179_v60  ;;  %v2602_v23 = vpop.permute.xlu2 %469 }
 0x273   :  { %vm432_vm7 = vmor %vm430_vm6, %vm431_vm5 }
 0x274   :  { %v426_v2 = vmul.f32 %v2179_v60, %v425_v63  ;;  %v423_v3 = vsel %vm422_vm4, %v2177_v52, %v419_v1 }
 0x275   :  { %v434_v4 = vmul.f32 %v423_v3, %v2555_v0  ;;  %v436_v17 = vmul.f32 %v423_v3, %v2576_v14  ;;  %1045 = vmatpush.bf16.msra.mxu1 %v2607_v24 }
 0x276   :  { %v427_v5 = vmul.f32 0.5, %v426_v2 }
 0x277   :  { %440 = vperm.xlu0 %2162, %v434_v4  }
 0x278   :  { %v428_v6 = vsub.f32 1.5, %v427_v5 }
 0x279   :  { %1046 = vmatpush.bf16.msra.mxu1 %v2613_v25 }
 0x27a   :  { %v429_v8 = vmul.f32 %v2179_v60, %v428_v6 }
 0x27c   :  { %v433_v11 = vsel %vm432_vm7, %v2179_v60, %v429_v8 }
 0x27d   :  { %v437_v12 = vmul.f32 %v433_v11, %v2561_v7  ;;  %v435_v13 = vmul.f32 %v433_v11, %v2566_v9  ;;  %1047 = vmatpush.bf16.msra.mxu1 %v2621_v31 }
 0x27f   :  { %479 = vperm.xlu0 %2162, %v149_v10   ;;  %455 = vperm.xlu2 %2164, %v437_v12  }
 0x280   :  { %445 = vperm.xlu1 %2163, %v435_v13  }
 0x281   :  { %1048 = vmatpush.bf16.msra.mxu1 %v2633_v35 }
 0x285   :  { %1049 = vmatpush.bf16.msra.mxu1 %v2643_v27 }
 0x288   :  { %450 = vperm.xlu1 %2163, %v436_v17  }
 0x290   :  { %474 = vperm.xlu1 %2163, %v148_v18  }
 0x2d9   :  { %v456_v33 = vpop.permute.xlu2 %455 }
 0x2da   :  { %v461_v37 = vmul.f32 %v456_v33, %v411_v34 }
 0x2e9   :  { %v441_v29 = vpop.permute.xlu0 %440 }
 0x2ea   :  { %v458_v30 = vmul.f32 %v441_v29, %v408_v28 }
 0x2ec   :  { %v2624_v32 = vadd.f32 %v2587_v20, %v458_v30 }
 0x2ee   :  { %v486_v15 = vmin.f32 %v2624_v32, 20.0  ;;  %vm518_vm8 = vcmp.gt.f32.partialorder %v2624_v32, 20.0 }
 0x2f0   :  { %v490_v38 = vmul.f32 1.442695, %v486_v15 }
 0x2f1   :  { %v2635_v39 = vpop.permute.xlu0 %479 }
 0x2f2   :  { %2180 = vpow2.f32 %v490_v38  ;;  %v2646_v41 = vadd.f32 %v2635_v39, %v461_v37  ;;  %v446_v42 = vpop.permute.xlu1 %445 }
 0x2f3   :  { %v459_v43 = vmul.f32 %v446_v42, %v409_v40 }
 0x2f4   :  { %v489_v45 = vmin.f32 %v2646_v41, 20.0  ;;  %vm521_vm11 = vcmp.gt.f32.partialorder %v2646_v41, 20.0 }
 0x2f5   :  { %v483_v46 = vadd.f32 %v2602_v23, %v459_v43 }
 0x2f6   :  { %v496_v26 = vmul.f32 1.442695, %v489_v45 }
 0x2f7   :  { %v487_v44 = vmin.f32 %v483_v46, 20.0  ;;  %vm519_vm9 = vcmp.gt.f32.partialorder %v483_v46, 20.0 }
 0x2f8   :  { %v2181_v47 = vpop.eup %2180  ;;  %2182 = vpow2.f32 %v496_v26 }
 0x2f9   :  { %v498_v50 = vadd.f32 2.0, %v2181_v47  ;;  %v492_v51 = vmul.f32 1.442695, %v487_v44 }
 0x2fa   :  { %v451_v52 = vpop.permute.xlu1 %450 }
 0x2fb   :  { %v502_v53 = vmul.f32 %v2181_v47, %v498_v50  ;;  %2184 = vpow2.f32 %v492_v51  ;;  %v460_v60 = vmul.f32 %v451_v52, %v410_v55 }
 0x2fd   :  { %v506_v54 = vadd.f32 2.0, %v502_v53 }
 0x2fe   :  { %v2183_v56 = vpop.eup %2182 }
 0x2ff   :  { %2186 = vrcp.f32 %v506_v54  ;;  %v501_v4 = vadd.f32 2.0, %v2183_v56 }
 0x301   :  { %v2185_v57 = vpop.eup %2184  ;;  %v505_v16 = vmul.f32 %v2183_v56, %v501_v4 }
 0x302   :  { %v499_v63 = vadd.f32 2.0, %v2185_v57  ;;  %v2656_v1 = vpop.permute.xlu1 %474 }
 0x303   :  { %v484_v2 = vadd.f32 %v2656_v1, %v460_v60  ;;  %v509_v11 = vadd.f32 2.0, %v505_v16 }
 0x304   :  { %v503_v3 = vmul.f32 %v2185_v57, %v499_v63 }
 0x305   :  { %v488_v5 = vmin.f32 %v484_v2, 20.0  ;;  %v2187_v6 = vpop.eup %2186  ;;  %vm520_vm10 = vcmp.gt.f32.partialorder %v484_v2, 20.0 }
 0x306   :  { %v507_v8 = vadd.f32 2.0, %v503_v3  ;;  %v514_v36 = vmul.f32 %v2187_v6, %v502_v53 }
 0x307   :  { %v494_v10 = vmul.f32 1.442695, %v488_v5 }
 0x308   :  { %2188 = vrcp.f32 %v507_v8  ;;  %v522_v12 = vmul.f32 %v514_v36, %v2624_v32 }
 0x309   :  { %2190 = vpow2.f32 %v494_v10 }
 0x30a   :  { %2192 = vrcp.f32 %v509_v11  ;;  %v526_v30 = vsel %vm518_vm8, %v2624_v32, %v522_v12 }
 0x30b   :  { %v2668_v15 = vadd.f32 %v526_v30, %v2491_v48 }
 0x30e   :  { %v2189_v13 = vpop.eup %2188 }
 0x30f   :  { %v2191_v17 = vpop.eup %2190  ;;  %v515_v18 = vmul.f32 %v2189_v13, %v503_v3 }
 0x310   :  { %v500_v28 = vadd.f32 2.0, %v2191_v17  ;;  %v2193_v40 = vpop.eup %2192 }
 0x311   :  { %v523_v29 = vmul.f32 %v515_v18, %v483_v46  ;;  %v517_v43 = vmul.f32 %v2193_v40, %v505_v16 }
 0x312   :  { %v504_v33 = vmul.f32 %v2191_v17, %v500_v28 }
 0x313   :  { %v527_v34 = vsel %vm519_vm9, %v483_v46, %v523_v29  ;;  %v525_v26 = vmul.f32 %v517_v43, %v2646_v41 }
 0x314   :  { %v2671_v37 = vadd.f32 %v527_v34, %v2493_v49  ;;  %v508_v38 = vadd.f32 2.0, %v504_v33 }
 0x315   :  { %v529_v49 = vsel %vm521_vm11, %v2646_v41, %v525_v26 }
 0x316   :  { %v534_v42 = vpack.c.bf16 %v2671_v37, %v2668_v15  ;;  %2194 = vrcp.f32 %v508_v38  ;;  %v2682_v47 = vadd.f32 %v529_v49, %v2499_v59 }
 0x318   :  { %608 = vmatmul.bf16.vlgmr.msrb.gmra.mxu1 %v534_v42 }
 0x31c   :  { %v2195_v32 = vpop.eup %2194 }
 0x31d   :  { %v516_v45 = vmul.f32 %v2195_v32, %v504_v33 }
 0x31f   :  { %v524_v44 = vmul.f32 %v516_v45, %v484_v2 }
 0x321   :  { %v528_v48 = vsel %vm520_vm10, %v484_v2, %v524_v44 }
 0x322   :  { %v2679_v46 = vadd.f32 %v528_v48, %v2497_v58 }
 0x324   :  { %v535_v50 = vpack.c.bf16 %v2682_v47, %v2679_v46 }
 0x328   :  { %613 = vmatmul.bf16.gmra.mxu1 %v535_v50 }
 0x395   :  { %v609_v51 = vpop.f32.mrf.mxu1 }
 0x39d   :  { %v611_v52 = vpop.f32.mrf.mxu1 }
 0x39e   :  { %633 = vmatpush.msrb.mxu3 %v611_v52 }
 0x3a0   :  { %634 = vmatpush.msrb.mxu3 %v609_v51 }
 0x3a1   :  { %2025 = vmatmul.msk.f32.vlgmr.msrb.gmra.mxu3 %vm75_vm0, %v2503_v61 }
 0x3a2   :  { %823 = vmatpush.bf16.msra.mxu3 %v2585_v19 }
 0x3a5   :  { %v614_v41 = vpop.f32.mrf.mxu1 }
 0x3a6   :  { %824 = vmatpush.bf16.msra.mxu3 %v2593_v21 }
 0x3a9   :  { %2026 = vmatmul.msk.f32.gmra.mxu3 %vm75_vm0, %v2505_v62 }
 0x3aa   :  { %825 = vmatpush.bf16.msra.mxu3 %v2599_v22 }
 0x3ad   :  { %v616_v58 = vpop.f32.mrf.mxu1 }
 0x3ae   :  { %656 = vmatpush.msra.mxu0 %v616_v58  ;;  %826 = vmatpush.bf16.msra.mxu3 %v2607_v24 }
 0x3b0   :  { %657 = vmatpush.msra.mxu0 %v614_v41 }
 0x3b1   :  { %2027 = vmatmul.msk.f32.vlgmr.msra.gmra.mxu0 %vm75_vm0, %v2503_v61 }
 0x3b2   :  { %827 = vmatpush.bf16.msra.mxu3 %v2613_v25 }
 0x3b6   :  { %828 = vmatpush.bf16.msra.mxu3 %v2621_v31 }
 0x3b9   :  { %2028 = vmatmul.msk.f32.gmra.mxu0 %vm75_vm0, %v2505_v62 }
 0x3ba   :  { %829 = vmatpush.bf16.msra.mxu3 %v2633_v35 }
 0x3be   :  { %830 = vmatpush.bf16.msra.mxu3 %v2643_v27 }
 0x3c2   :  { %1261 = vmatpush.bf16.msrb.mxu3 %v2585_v19  ;;  %v2713_v19 = vld [vmem:[%s3118_s8] ss:$0 sm:$0xff] }
 0x3c6   :  { %1262 = vmatpush.bf16.msrb.mxu3 %v2593_v21 }
 0x3ca   :  { %1263 = vmatpush.bf16.msrb.mxu3 %v2599_v22 }
 0x3ce   :  { %1264 = vmatpush.bf16.msrb.mxu3 %v2607_v24 }
 0x3d2   :  { %1265 = vmatpush.bf16.msrb.mxu3 %v2613_v25 }
 0x3d6   :  { %1266 = vmatpush.bf16.msrb.mxu3 %v2621_v31 }
 0x3da   :  { %1267 = vmatpush.bf16.msrb.mxu3 %v2633_v35 }
 0x3de   :  { %1268 = vmatpush.bf16.msrb.mxu3 %v2643_v27 }
 0x424   :  { %v636_v59 = vpop.f32.mrf.mxu3 }
 0x425   :  { %v665_v53 = vadd.f32 %v636_v59, %v609_v51 }
 0x427   :  { %v673_v21 = vadd.f32 %v2713_v19, %v665_v53 }
 0x429   :  { %v681_v24 = vmul.f32 0.01, %v673_v21  ;;  %vm677_vm12 = vcmp.ge.f32.partialorder %v673_v21, 0.0 }
 0x42b   :  { %v2718_v56 = vsel %vm677_vm12, %v673_v21, %v681_v24 }
 0x42c   :  { %v639_v22 = vpop.f32.mrf.mxu3  ;;  %v689_v2 = vmul.f32 %v2718_v56, %v2718_v56 }
 0x42d   :  { %v666_v55 = vadd.f32 %v639_v22, %v611_v52 }
 0x42e   :  { %v659_v54 = vpop.f32.mrf.mxu0 }
 0x42f   :  { %v667_v25 = vadd.f32 %v659_v54, %v614_v41  ;;  %v674_v35 = vadd.f32 %v2713_v19, %v666_v55 }
 0x431   :  { %v675_v31 = vadd.f32 %v2713_v19, %v667_v25  ;;  %v682_v4 = vmul.f32 0.01, %v674_v35  ;;  %vm678_vm14 = vcmp.ge.f32.partialorder %v674_v35, 0.0 }
 0x433   :  { %v683_v27 = vmul.f32 0.01, %v675_v31  ;;  %vm679_vm13 = vcmp.ge.f32.partialorder %v675_v31, 0.0  ;;  %v686_v16 = vsel %vm678_vm14, %v674_v35, %v682_v4 }
 0x434   :  { %v690_v12 = vmul.f32 %v686_v16, %v686_v16 }
 0x435   :  { %v2720_v57 = vsel %vm679_vm13, %v675_v31, %v683_v27 }
 0x436   :  { %v662_v60 = vpop.f32.mrf.mxu0  ;;  %v693_v63 = vadd.f32 %v2720_v57, %v2718_v56  ;;  %v691_v3 = vmul.f32 %v2720_v57, %v2720_v57 }
 0x437   :  { %v668_v5 = vadd.f32 %v662_v60, %v616_v58 }
 0x438   :  { %697 = vadd.xlane.f32.xlu2 %v693_v63  ;;  %v695_v6 = vadd.f32 %v691_v3, %v689_v2 }
 0x439   :  { %v676_v8 = vadd.f32 %v2713_v19, %v668_v5 }
 0x43a   :  { %703 = vadd.xlane.f32.xlu0 %v695_v6 }
 0x43b   :  { %v684_v10 = vmul.f32 0.01, %v676_v8  ;;  %vm680_vm15 = vcmp.ge.f32.partialorder %v676_v8, 0.0 }
 0x43d   :  { %v2729_v36 = vsel %vm680_vm15, %v676_v8, %v684_v10 }
 0x43e   :  { %v694_v11 = vadd.f32 %v2729_v36, %v686_v16  ;;  %v692_v13 = vmul.f32 %v2729_v36, %v2729_v36 }
 0x440   :  { %699 = vadd.xlane.f32.xlu1 %v694_v11  ;;  %v696_v17 = vadd.f32 %v692_v13, %v690_v12 }
 0x442   :  { %705 = vadd.xlane.f32.xlu2 %v696_v17 }
 0x4ab   :  { %v698_v18 = vpop.xlane.xlu2 %697 }
 0x4ac   :  { %v701_v28 = vmul.f32 0.00390625, %v698_v18 }
 0x4ad   :  { %v704_v29 = vpop.xlane.xlu0 %703 }
 0x4ae   :  { %v709_v30 = vmul.f32 %v701_v28, %v701_v28  ;;  %v707_v33 = vmul.f32 0.00390625, %v704_v29  ;;  %v717_v10 = vsub.f32 %v2720_v57, %v701_v28  ;;  %v715_v11 = vsub.f32 %v2718_v56, %v701_v28 }
 0x4b0   :  { %v711_v34 = vsub.f32 %v707_v33, %v709_v30 }
 0x4b2   :  { %v713_v38 = vmax.f32 %v711_v34, 0.0 }
 0x4b3   :  { %v700_v40 = vpop.xlane.xlu1 %699 }
 0x4b4   :  { %v719_v42 = vadd.f32 1e-05, %v713_v38  ;;  %v2734_v43 = vmul.f32 0.00390625, %v700_v40 }
 0x4b5   :  { %v706_v32 = vpop.xlane.xlu2 %705 }
 0x4b6   :  { %2196 = vrsqrt.f32 %v719_v42  ;;  %v710_v45 = vmul.f32 %v2734_v43, %v2734_v43  ;;  %v708_v26 = vmul.f32 0.00390625, %v706_v32  ;;  %vm727_vm2 = vweird.f32 %v719_v42 }
 0x4b7   :  { %v716_v2 = vsub.f32 %v686_v16, %v2734_v43  ;;  %v718_v57 = vsub.f32 %v2729_v36, %v2734_v43 }
 0x4b8   :  { %v712_v44 = vsub.f32 %v708_v26, %v710_v45 }
 0x4ba   :  { %v714_v48 = vmax.f32 %v712_v44, 0.0 }
 0x4bc   :  { %v2197_v49 = vpop.eup %2196  ;;  %v720_v50 = vadd.f32 1e-05, %v714_v48 }
 0x4bd   :  { %v722_v51 = vmul.f32 %v2197_v49, %v719_v42  ;;  %vm728_vm1 = vweird.f32 %v2197_v49 }
 0x4be   :  { %2198 = vrsqrt.f32 %v720_v50  ;;  %vm729_vm3 = vmor %vm727_vm2, %vm728_vm1  ;;  %vm737_vm5 = vweird.f32 %v720_v50 }
 0x4bf   :  { %v723_v52 = vmul.f32 %v2197_v49, %v722_v51 }
 0x4c1   :  { %v724_v41 = vmul.f32 0.5, %v723_v52 }
 0x4c3   :  { %v725_v58 = vsub.f32 1.5, %v724_v41 }
 0x4c4   :  { %v2199_v59 = vpop.eup %2198 }
 0x4c5   :  { %v732_v53 = vmul.f32 %v2199_v59, %v720_v50  ;;  %v726_v21 = vmul.f32 %v2197_v49, %v725_v58  ;;  %vm738_vm4 = vweird.f32 %v2199_v59 }
 0x4c6   :  { %vm739_vm6 = vmor %vm737_vm5, %vm738_vm4 }
 0x4c7   :  { %v733_v22 = vmul.f32 %v2199_v59, %v732_v53  ;;  %v730_v54 = vsel %vm729_vm3, %v2197_v49, %v726_v21 }
 0x4c8   :  { %v743_v24 = vmul.f32 %v730_v54, %v2576_v14  ;;  %v741_v55 = vmul.f32 %v730_v54, %v2555_v0 }
 0x4c9   :  { %v734_v25 = vmul.f32 0.5, %v733_v22 }
 0x4ca   :  { %757 = vperm.xlu0 %2162, %v743_v24   ;;  %747 = vperm.xlu1 %2163, %v741_v55  }
 0x4cb   :  { %v735_v31 = vsub.f32 1.5, %v734_v25 }
 0x4cd   :  { %v736_v35 = vmul.f32 %v2199_v59, %v735_v31 }
 0x4cf   :  { %v740_v27 = vsel %vm739_vm6, %v2199_v59, %v736_v35 }
 0x4d0   :  { %v744_v60 = vmul.f32 %v740_v27, %v2561_v7  ;;  %v742_v63 = vmul.f32 %v740_v27, %v2566_v9 }
 0x4d2   :  { %762 = vperm.xlu1 %2163, %v744_v60   ;;  %752 = vperm.xlu2 %2164, %v742_v63  }
 0x52c   :  { %v753_v3 = vpop.permute.xlu2 %752 }
 0x52d   :  { %v766_v4 = vmul.f32 %v753_v3, %v716_v2 }
 0x52f   :  { %v770_v5 = vadd.f32 %v766_v4, %v2602_v23 }
 0x531   :  { %v774_v6 = vmin.f32 %v770_v5, 20.0  ;;  %vm806_vm7 = vcmp.gt.f32.partialorder %v770_v5, 20.0 }
 0x533   :  { %v779_v8 = vmul.f32 1.442695, %v774_v6 }
 0x535   :  { %2200 = vpow2.f32 %v779_v8 }
 0x53b   :  { %v2201_v12 = vpop.eup %2200 }
 0x53c   :  { %v758_v13 = vpop.permute.xlu0 %757  ;;  %v748_v17 = vpop.permute.xlu1 %747  ;;  %v786_v30 = vadd.f32 2.0, %v2201_v12 }
 0x53d   :  { %v767_v18 = vmul.f32 %v758_v13, %v717_v10  ;;  %v765_v29 = vmul.f32 %v748_v17, %v715_v11 }
 0x53e   :  { %v790_v40 = vmul.f32 %v2201_v12, %v786_v30 }
 0x53f   :  { %v771_v33 = vadd.f32 %v767_v18, %v2656_v1  ;;  %v769_v16 = vadd.f32 %v765_v29, %v2587_v20 }
 0x540   :  { %v794_v28 = vadd.f32 2.0, %v790_v40 }
 0x541   :  { %v775_v34 = vmin.f32 %v771_v33, 20.0  ;;  %v773_v38 = vmin.f32 %v769_v16, 20.0  ;;  %vm805_vm8 = vcmp.gt.f32.partialorder %v769_v16, 20.0  ;;  %vm807_vm10 = vcmp.gt.f32.partialorder %v771_v33, 20.0 }
 0x543   :  { %v781_v42 = vmul.f32 1.442695, %v775_v34  ;;  %v777_v32 = vmul.f32 1.442695, %v773_v38 }
 0x544   :  { %v763_v45 = vpop.permute.xlu1 %762 }
 0x545   :  { %2202 = vpow2.f32 %v781_v42  ;;  %v768_v56 = vmul.f32 %v763_v45, %v718_v57 }
 0x546   :  { %2204 = vpow2.f32 %v777_v32 }
 0x547   :  { %v772_v26 = vadd.f32 %v768_v56, %v2635_v39  ;;  %2206 = vrcp.f32 %v794_v28 }
 0x549   :  { %v776_v44 = vmin.f32 %v772_v26, 20.0  ;;  %vm808_vm9 = vcmp.gt.f32.partialorder %v772_v26, 20.0 }
 0x54b   :  { %v2203_v48 = vpop.eup %2202  ;;  %v783_v49 = vmul.f32 1.442695, %v776_v44 }
 0x54c   :  { %v2205_v50 = vpop.eup %2204  ;;  %v787_v41 = vadd.f32 2.0, %v2203_v48 }
 0x54d   :  { %v785_v51 = vadd.f32 2.0, %v2205_v50  ;;  %2208 = vpow2.f32 %v783_v49  ;;  %v2207_v58 = vpop.eup %2206 }
 0x54e   :  { %v791_v36 = vmul.f32 %v2203_v48, %v787_v41  ;;  %v802_v43 = vmul.f32 %v2207_v58, %v790_v40 }
 0x54f   :  { %v789_v52 = vmul.f32 %v2205_v50, %v785_v51 }
 0x550   :  { %v795_v54 = vadd.f32 2.0, %v791_v36  ;;  %v810_v24 = vmul.f32 %v802_v43, %v770_v5 }
 0x551   :  { %v793_v59 = vadd.f32 2.0, %v789_v52 }
 0x552   :  { %v814_v27 = vsel %vm806_vm7, %v770_v5, %v810_v24 }
 0x553   :  { %v2209_v53 = vpop.eup %2208  ;;  %2210 = vrcp.f32 %v793_v59  ;;  %v2755_v2 = vadd.f32 %v814_v27, %v2671_v37 }
 0x554   :  { %v788_v21 = vadd.f32 2.0, %v2209_v53 }
 0x556   :  { %v792_v22 = vmul.f32 %v2209_v53, %v788_v21 }
 0x558   :  { %v796_v55 = vadd.f32 2.0, %v792_v22 }
 0x559   :  { %v2211_v25 = vpop.eup %2210 }
 0x55a   :  { %v801_v31 = vmul.f32 %v2211_v25, %v789_v52  ;;  %2212 = vrcp.f32 %v796_v55 }
 0x55b   :  { %2214 = vrcp.f32 %v795_v54 }
 0x55c   :  { %v809_v35 = vmul.f32 %v801_v31, %v769_v16 }
 0x55e   :  { %v813_v60 = vsel %vm805_vm8, %v769_v16, %v809_v35 }
 0x55f   :  { %v2752_v63 = vadd.f32 %v813_v60, %v2668_v15 }
 0x560   :  { %v2213_v3 = vpop.eup %2212 }
 0x561   :  { %v2215_v4 = vpop.eup %2214  ;;  %v821_v6 = vpack.c.bf16 %v2755_v2, %v2752_v63  ;;  %v804_v8 = vmul.f32 %v2213_v3, %v792_v22 }
 0x562   :  { %v803_v10 = vmul.f32 %v2215_v4, %v791_v36 }
 0x563   :  { %831 = vmatmul.bf16.vlgmr.msra.gmra.mxu3 %v821_v6  ;;  %v812_v11 = vmul.f32 %v804_v8, %v772_v26 }
 0x564   :  { %v811_v12 = vmul.f32 %v803_v10, %v771_v33 }
 0x565   :  { %v816_v5 = vsel %vm808_vm9, %v772_v26, %v812_v11 }
 0x566   :  { %v815_v13 = vsel %vm807_vm10, %v771_v33, %v811_v12  ;;  %v2760_v15 = vadd.f32 %v816_v5, %v2682_v47 }
 0x567   :  { %v2763_v37 = vadd.f32 %v815_v13, %v2679_v46 }
 0x569   :  { %v822_v17 = vpack.c.bf16 %v2760_v15, %v2763_v37 }
 0x573   :  { %836 = vmatmul.bf16.gmra.mxu3 %v822_v17 }
 0x5e6   :  { %v832_v18 = vpop.f32.mrf.mxu3 }
 0x5ee   :  { %v834_v29 = vpop.f32.mrf.mxu3 }
 0x5ef   :  { %856 = vmatpush.msrb.mxu0 %v834_v29 }
 0x5f1   :  { %857 = vmatpush.msrb.mxu0 %v832_v18 }
 0x5f2   :  { %2029 = vmatmul.msk.f32.vlgmr.msrb.gmra.mxu0 %vm75_vm0, %v2503_v61 }
 0x5f6   :  { %v837_v30 = vpop.f32.mrf.mxu3 }
 0x5fa   :  { %2030 = vmatmul.msk.f32.gmra.mxu0 %vm75_vm0, %v2505_v62 }
 0x5fe   :  { %v839_v47 = vpop.f32.mrf.mxu3 }
 0x5ff   :  { %879 = vmatpush.msra.mxu2 %v839_v47 }
 0x601   :  { %880 = vmatpush.msra.mxu2 %v837_v30 }
 0x602   :  { %2031 = vmatmul.msk.f32.vlgmr.msra.gmra.mxu2 %vm75_vm0, %v2503_v61 }
 0x60a   :  { %2032 = vmatmul.msk.f32.gmra.mxu2 %vm75_vm0, %v2505_v62 }
 0x66f   :  { %v859_v46 = vpop.f32.mrf.mxu0 }
 0x670   :  { %v888_v33 = vadd.f32 %v859_v46, %v832_v18 }
 0x672   :  { %v892_v16 = vadd.f32 %v2713_v19, %v888_v33 }
 0x674   :  { %v900_v40 = vmul.f32 0.01, %v892_v16  ;;  %vm896_vm11 = vcmp.ge.f32.partialorder %v892_v16, 0.0 }
 0x676   :  { %v2778_v28 = vsel %vm896_vm11, %v892_v16, %v900_v40 }
 0x677   :  { %v862_v34 = vpop.f32.mrf.mxu0  ;;  %v908_v49 = vmul.f32 %v2778_v28, %v2778_v28 }
 0x678   :  { %v889_v42 = vadd.f32 %v862_v34, %v834_v29 }
 0x67a   :  { %v893_v45 = vadd.f32 %v2713_v19, %v889_v42 }
 0x67c   :  { %v901_v51 = vmul.f32 0.01, %v893_v45  ;;  %vm897_vm13 = vcmp.ge.f32.partialorder %v893_v45, 0.0 }
 0x67e   :  { %v2789_v53 = vsel %vm897_vm13, %v893_v45, %v901_v51 }
 0x67f   :  { %v909_v21 = vmul.f32 %v2789_v53, %v2789_v53 }
 0x685   :  { %v882_v38 = vpop.f32.mrf.mxu2 }
 0x686   :  { %v890_v32 = vadd.f32 %v882_v38, %v837_v30 }
 0x688   :  { %v894_v57 = vadd.f32 %v2713_v19, %v890_v32 }
 0x68a   :  { %v902_v56 = vmul.f32 0.01, %v894_v57  ;;  %vm898_vm12 = vcmp.ge.f32.partialorder %v894_v57, 0.0 }
 0x68c   :  { %v2780_v26 = vsel %vm898_vm12, %v894_v57, %v902_v56 }
 0x68d   :  { %v885_v44 = vpop.f32.mrf.mxu2  ;;  %v912_v48 = vadd.f32 %v2780_v26, %v2778_v28  ;;  %v910_v50 = vmul.f32 %v2780_v26, %v2780_v26 }
 0x68e   :  { %v891_v52 = vadd.f32 %v885_v44, %v839_v47 }
 0x68f   :  { %916 = vadd.xlane.f32.xlu0 %v912_v48  ;;  %v914_v41 = vadd.f32 %v910_v50, %v908_v49 }
 0x690   :  { %v895_v58 = vadd.f32 %v2713_v19, %v891_v52 }
 0x691   :  { %922 = vadd.xlane.f32.xlu1 %v914_v41 }
 0x692   :  { %v903_v59 = vmul.f32 0.01, %v895_v58  ;;  %vm899_vm14 = vcmp.ge.f32.partialorder %v895_v58, 0.0 }
 0x694   :  { %v2791_v36 = vsel %vm899_vm14, %v895_v58, %v903_v59 }
 0x695   :  { %v913_v43 = vadd.f32 %v2791_v36, %v2789_v53  ;;  %v911_v22 = vmul.f32 %v2791_v36, %v2791_v36 }
 0x697   :  { %918 = vadd.xlane.f32.xlu2 %v913_v43  ;;  %v915_v54 = vadd.f32 %v911_v22, %v909_v21 }
 0x699   :  { %924 = vadd.xlane.f32.xlu0 %v915_v54 }
 0x702   :  { %v917_v24 = vpop.xlane.xlu0 %916 }
 0x703   :  { %v920_v55 = vmul.f32 0.00390625, %v917_v24 }
 0x704   :  { %v923_v25 = vpop.xlane.xlu1 %922 }
 0x705   :  { %v928_v31 = vmul.f32 %v920_v55, %v920_v55  ;;  %v926_v35 = vmul.f32 0.00390625, %v923_v25  ;;  %v936_v59 = vsub.f32 %v2780_v26, %v920_v55 }
 0x707   :  { %v930_v27 = vsub.f32 %v926_v35, %v928_v31 }
 0x709   :  { %v932_v60 = vmax.f32 %v930_v27, 0.0 }
 0x70a   :  { %v919_v3 = vpop.xlane.xlu2 %918 }
 0x70b   :  { %v938_v4 = vadd.f32 1e-05, %v932_v60  ;;  %v921_v6 = vmul.f32 0.00390625, %v919_v3 }
 0x70c   :  { %v925_v8 = vpop.xlane.xlu0 %924 }
 0x70d   :  { %2216 = vrsqrt.f32 %v938_v4  ;;  %v929_v10 = vmul.f32 %v921_v6, %v921_v6  ;;  %v927_v11 = vmul.f32 0.00390625, %v925_v8  ;;  %vm946_vm1 = vweird.f32 %v938_v4 }
 0x70e   :  { %v937_v58 = vsub.f32 %v2791_v36, %v921_v6  ;;  %v935_v24 = vsub.f32 %v2789_v53, %v921_v6 }
 0x70f   :  { %v931_v12 = vsub.f32 %v927_v11, %v929_v10 }
 0x711   :  { %v933_v5 = vmax.f32 %v931_v12, 0.0 }
 0x713   :  { %v2217_v13 = vpop.eup %2216  ;;  %v939_v17 = vadd.f32 1e-05, %v933_v5 }
 0x714   :  { %v941_v18 = vmul.f32 %v2217_v13, %v938_v4  ;;  %vm947_vm15 = vweird.f32 %v2217_v13 }
 0x715   :  { %2218 = vrsqrt.f32 %v939_v17  ;;  %vm948_vm2 = vmor %vm946_vm1, %vm947_vm15  ;;  %vm956_vm4 = vweird.f32 %v939_v17 }
 0x716   :  { %v942_v29 = vmul.f32 %v2217_v13, %v941_v18 }
 0x718   :  { %v943_v30 = vmul.f32 0.5, %v942_v29 }
 0x71a   :  { %v944_v47 = vsub.f32 1.5, %v943_v30 }
 0x71b   :  { %v2219_v46 = vpop.eup %2218 }
 0x71c   :  { %v951_v33 = vmul.f32 %v2219_v46, %v939_v17  ;;  %v945_v16 = vmul.f32 %v2217_v13, %v944_v47  ;;  %vm957_vm3 = vweird.f32 %v2219_v46 }
 0x71d   :  { %vm958_vm5 = vmor %vm956_vm4, %vm957_vm3 }
 0x71e   :  { %v952_v34 = vmul.f32 %v2219_v46, %v951_v33  ;;  %v949_v38 = vsel %vm948_vm2, %v2217_v13, %v945_v16 }
 0x71f   :  { %v960_v40 = vmul.f32 %v949_v38, %v2555_v0  ;;  %v962_v42 = vmul.f32 %v949_v38, %v2576_v14  ;;  %v934_v0 = vsub.f32 %v2778_v28, %v920_v55 }
 0x720   :  { %v953_v32 = vmul.f32 0.5, %v952_v34 }
 0x721   :  { %966 = vperm.xlu2 %2164, %v960_v40   ;;  %976 = vperm.xlu0 %2162, %v962_v42  }
 0x722   :  { %v954_v57 = vsub.f32 1.5, %v953_v32 }
 0x724   :  { %v955_v45 = vmul.f32 %v2219_v46, %v954_v57 }
 0x726   :  { %v959_v56 = vsel %vm958_vm5, %v2219_v46, %v955_v45 }
 0x727   :  { %v963_v44 = vmul.f32 %v959_v56, %v2561_v7  ;;  %v961_v48 = vmul.f32 %v959_v56, %v2566_v9 }
 0x729   :  { %981 = vperm.xlu2 %2164, %v963_v44   ;;  %971 = vperm.xlu1 %2163, %v961_v48  }
 0x77b   :  { %v967_v49 = vpop.permute.xlu2 %966 }
 0x77c   :  { %v984_v50 = vmul.f32 %v967_v49, %v934_v0 }
 0x77e   :  { %v988_v14 = vadd.f32 %v984_v50, %v2587_v20 }
 0x780   :  { %v992_v51 = vmin.f32 %v988_v14, 20.0  ;;  %vm1024_vm6 = vcmp.gt.f32.partialorder %v988_v14, 20.0 }
 0x782   :  { %v996_v52 = vmul.f32 1.442695, %v992_v51 }
 0x783   :  { %v982_v41 = vpop.permute.xlu2 %981 }
 0x784   :  { %v987_v43 = vmul.f32 %v982_v41, %v937_v58  ;;  %2220 = vpow2.f32 %v996_v52 }
 0x786   :  { %v991_v22 = vadd.f32 %v987_v43, %v2635_v39 }
 0x788   :  { %v995_v25 = vmin.f32 %v991_v22, 20.0  ;;  %vm1027_vm9 = vcmp.gt.f32.partialorder %v991_v22, 20.0 }
 0x78a   :  { %v2221_v54 = vpop.eup %2220  ;;  %v1002_v26 = vmul.f32 1.442695, %v995_v25 }
 0x78b   :  { %v1004_v27 = vadd.f32 2.0, %v2221_v54 }
 0x78d   :  { %v1008_v3 = vmul.f32 %v2221_v54, %v1004_v27 }
 0x78f   :  { %v1012_v8 = vadd.f32 2.0, %v1008_v3 }
 0x793   :  { %v977_v21 = vpop.permute.xlu0 %976 }
 0x794   :  { %v986_v7 = vmul.f32 %v977_v21, %v936_v59 }
 0x796   :  { %v990_v9 = vadd.f32 %v986_v7, %v2656_v1 }
 0x798   :  { %v994_v28 = vmin.f32 %v990_v9, 20.0  ;;  %vm1026_vm8 = vcmp.gt.f32.partialorder %v990_v9, 20.0 }
 0x79a   :  { %v1000_v60 = vmul.f32 1.442695, %v994_v28 }
 0x79b   :  { %v972_v31 = vpop.permute.xlu1 %971 }
 0x79c   :  { %v985_v35 = vmul.f32 %v972_v31, %v935_v24  ;;  %2222 = vpow2.f32 %v1000_v60 }
 0x79d   :  { %2224 = vpow2.f32 %v1002_v26 }
 0x79e   :  { %v989_v36 = vadd.f32 %v985_v35, %v2602_v23 }
 0x7a0   :  { %v993_v55 = vmin.f32 %v989_v36, 20.0  ;;  %vm1025_vm7 = vcmp.gt.f32.partialorder %v989_v36, 20.0 }
 0x7a2   :  { %v998_v4 = vmul.f32 1.442695, %v993_v55  ;;  %v2223_v10 = vpop.eup %2222 }
 0x7a3   :  { %v2225_v11 = vpop.eup %2224  ;;  %v1006_v6 = vadd.f32 2.0, %v2223_v10 }
 0x7a4   :  { %2226 = vpow2.f32 %v998_v4  ;;  %v1007_v13 = vadd.f32 2.0, %v2225_v11 }
 0x7a5   :  { %2228 = vrcp.f32 %v1012_v8  ;;  %v1010_v29 = vmul.f32 %v2223_v10, %v1006_v6 }
 0x7a6   :  { %v1011_v30 = vmul.f32 %v2225_v11, %v1007_v13 }
 0x7a7   :  { %v1014_v46 = vadd.f32 2.0, %v1010_v29 }
 0x7a8   :  { %v1015_v33 = vadd.f32 2.0, %v1011_v30 }
 0x7aa   :  { %v2227_v12 = vpop.eup %2226 }
 0x7ab   :  { %v1005_v53 = vadd.f32 2.0, %v2227_v12  ;;  %v2229_v17 = vpop.eup %2228 }
 0x7ac   :  { %v1020_v47 = vmul.f32 %v2229_v17, %v1008_v3 }
 0x7ad   :  { %v1009_v5 = vmul.f32 %v2227_v12, %v1005_v53 }
 0x7ae   :  { %v1028_v16 = vmul.f32 %v1020_v47, %v988_v14 }
 0x7af   :  { %v1013_v18 = vadd.f32 2.0, %v1009_v5 }
 0x7b0   :  { %v1032_v42 = vsel %vm1024_vm6, %v988_v14, %v1028_v16 }
 0x7b1   :  { %2230 = vrcp.f32 %v1013_v18  ;;  %v2812_v45 = vadd.f32 %v1032_v42, %v2752_v63 }
 0x7b2   :  { %2232 = vrcp.f32 %v1014_v46 }
 0x7b3   :  { %2234 = vrcp.f32 %v1015_v33 }
 0x7b7   :  { %v2231_v34 = vpop.eup %2230 }
 0x7b8   :  { %v1021_v38 = vmul.f32 %v2231_v34, %v1009_v5  ;;  %v2233_v57 = vpop.eup %2232 }
 0x7b9   :  { %v2235_v44 = vpop.eup %2234  ;;  %v1022_v49 = vmul.f32 %v2233_v57, %v1010_v29 }
 0x7ba   :  { %v1029_v40 = vmul.f32 %v1021_v38, %v989_v36  ;;  %v1023_v0 = vmul.f32 %v2235_v44, %v1011_v30 }
 0x7bb   :  { %v1030_v50 = vmul.f32 %v1022_v49, %v990_v9 }
 0x7bc   :  { %v1033_v32 = vsel %vm1025_vm7, %v989_v36, %v1029_v40  ;;  %v1031_v51 = vmul.f32 %v1023_v0, %v991_v22 }
 0x7bd   :  { %v2815_v56 = vadd.f32 %v1033_v32, %v2755_v2  ;;  %v1034_v14 = vsel %vm1026_vm8, %v990_v9, %v1030_v50 }
 0x7be   :  { %v1035_v52 = vsel %vm1027_vm9, %v991_v22, %v1031_v51  ;;  %v2820_v41 = vadd.f32 %v1034_v14, %v2763_v37 }
 0x7bf   :  { %v1040_v48 = vpack.c.bf16 %v2815_v56, %v2812_v45  ;;  %v2823_v63 = vadd.f32 %v1035_v52, %v2760_v15 }
 0x7c1   :  { %1050 = vmatmul.bf16.vlgmr.msra.gmra.mxu1 %v1040_v48  ;;  %v1041_v2 = vpack.c.bf16 %v2823_v63, %v2820_v41 }
 0x7d1   :  { %1055 = vmatmul.bf16.gmra.mxu1 %v1041_v2 }
 0x83e   :  { %v1051_v58 = vpop.f32.mrf.mxu1 }
 0x846   :  { %v1053_v59 = vpop.f32.mrf.mxu1 }
 0x847   :  { %1075 = vmatpush.msra.mxu0 %v1053_v59 }
 0x849   :  { %1076 = vmatpush.msra.mxu0 %v1051_v58 }
 0x84a   :  { %2033 = vmatmul.msk.f32.vlgmr.msra.gmra.mxu0 %vm75_vm0, %v2503_v61 }
 0x84e   :  { %v1056_v43 = vpop.f32.mrf.mxu1 }
 0x852   :  { %2034 = vmatmul.msk.f32.gmra.mxu0 %vm75_vm0, %v2505_v62 }
 0x856   :  { %v1058_v37 = vpop.f32.mrf.mxu1 }
 0x857   :  { %1098 = vmatpush.msrb.mxu2 %v1058_v37 }
 0x859   :  { %1099 = vmatpush.msrb.mxu2 %v1056_v43 }
 0x85a   :  { %2035 = vmatmul.msk.f32.vlgmr.msrb.gmra.mxu2 %vm75_vm0, %v2503_v61 }
 0x862   :  { %2036 = vmatmul.msk.f32.gmra.mxu2 %vm75_vm0, %v2505_v62 }
 0x8c7   :  { %v1078_v15 = vpop.f32.mrf.mxu0 }
 0x8c8   :  { %v1107_v21 = vadd.f32 %v1078_v15, %v1051_v58 }
 0x8ca   :  { %v1111_v7 = vadd.f32 %v2713_v19, %v1107_v21  ;;  %v2865_v21 = vld [vmem:[%s3121_s11] sm:$0xff] }
 0x8cc   :  { %v1119_v54 = vmul.f32 0.01, %v1111_v7  ;;  %vm1115_vm10 = vcmp.ge.f32.partialorder %v1111_v7, 0.0 }
 0x8ce   :  { %v2838_v27 = vsel %vm1115_vm10, %v1111_v7, %v1119_v54 }
 0x8cf   :  { %v1081_v9 = vpop.f32.mrf.mxu0  ;;  %v1127_v55 = vmul.f32 %v2838_v27, %v2838_v27 }
 0x8d0   :  { %v1108_v28 = vadd.f32 %v1081_v9, %v1053_v59  ;;  %v2871_v9 = vld [vmem:[%s3121_s11 + $0x10] sm:$0xff] }
 0x8d2   :  { %v1112_v31 = vadd.f32 %v2713_v19, %v1108_v28 }
 0x8d4   :  { %v1120_v4 = vmul.f32 0.01, %v1112_v31  ;;  %vm1116_vm12 = vcmp.ge.f32.partialorder %v1112_v31, 0.0 }
 0x8d6   :  { %v1124_v53 = vsel %vm1116_vm12, %v1112_v31, %v1120_v4  ;;  %v2877_v31 = vld [vmem:[%s3121_s11 + $0x18] sm:$0xff] }
 0x8d7   :  { %v1128_v13 = vmul.f32 %v1124_v53, %v1124_v53 }
 0x8dd   :  { %v1101_v22 = vpop.f32.mrf.mxu2 }
 0x8de   :  { %v1109_v24 = vadd.f32 %v1101_v22, %v1056_v43 }
 0x8e0   :  { %v1113_v25 = vadd.f32 %v2713_v19, %v1109_v24 }
 0x8e2   :  { %v1121_v35 = vmul.f32 0.01, %v1113_v25  ;;  %vm1117_vm11 = vcmp.ge.f32.partialorder %v1113_v25, 0.0 }
 0x8e4   :  { %v2840_v60 = vsel %vm1117_vm11, %v1113_v25, %v1121_v35 }
 0x8e5   :  { %v1104_v36 = vpop.f32.mrf.mxu2  ;;  %v1131_v26 = vadd.f32 %v2840_v60, %v2838_v27  ;;  %v1129_v3 = vmul.f32 %v2840_v60, %v2840_v60 }
 0x8e6   :  { %v1110_v8 = vadd.f32 %v1104_v36, %v1058_v37  ;;  %v2883_v36 = vld [vmem:[%s3121_s11 + $0x8] sm:$0xff] }
 0x8e7   :  { %1135 = vadd.xlane.f32.xlu0 %v1131_v26  ;;  %v1133_v10 = vadd.f32 %v1129_v3, %v1127_v55 }
 0x8e8   :  { %v1114_v11 = vadd.f32 %v2713_v19, %v1110_v8 }
 0x8e9   :  { %1141 = vadd.xlane.f32.xlu2 %v1133_v10 }
 0x8ea   :  { %v1122_v12 = vmul.f32 0.01, %v1114_v11  ;;  %vm1118_vm13 = vcmp.ge.f32.partialorder %v1114_v11, 0.0 }
 0x8ec   :  { %v2849_v6 = vsel %vm1118_vm13, %v1114_v11, %v1122_v12 }
 0x8ed   :  { %v1132_v5 = vadd.f32 %v2849_v6, %v1124_v53  ;;  %v1130_v17 = vmul.f32 %v2849_v6, %v2849_v6 }
 0x8ef   :  { %1137 = vadd.xlane.f32.xlu1 %v1132_v5  ;;  %v1134_v18 = vadd.f32 %v1130_v17, %v1128_v13 }
 0x8f1   :  { %1143 = vadd.xlane.f32.xlu0 %v1134_v18 }
 0x95a   :  { %v1136_v29 = vpop.xlane.xlu0 %1135 }
 0x95b   :  { %v2854_v30 = vmul.f32 0.00390625, %v1136_v29 }
 0x95c   :  { %v1142_v47 = vpop.xlane.xlu2 %1141 }
 0x95d   :  { %v1147_v46 = vmul.f32 %v2854_v30, %v2854_v30  ;;  %v1145_v33 = vmul.f32 0.00390625, %v1142_v47  ;;  %v1153_v5 = vsub.f32 %v2838_v27, %v2854_v30  ;;  %v1155_v13 = vsub.f32 %v2840_v60, %v2854_v30 }
 0x95f   :  { %v1149_v16 = vsub.f32 %v1145_v33, %v1147_v46 }
 0x961   :  { %v1151_v34 = vmax.f32 %v1149_v16, 0.0 }
 0x962   :  { %v1138_v38 = vpop.xlane.xlu1 %1137 }
 0x963   :  { %v1157_v40 = vadd.f32 1e-05, %v1151_v34  ;;  %v2858_v42 = vmul.f32 0.00390625, %v1138_v38 }
 0x964   :  { %v1144_v32 = vpop.xlane.xlu0 %1143 }
 0x965   :  { %2236 = vrsqrt.f32 %v1157_v40  ;;  %v1148_v57 = vmul.f32 %v2858_v42, %v2858_v42  ;;  %v1146_v44 = vmul.f32 0.00390625, %v1144_v32  ;;  %vm1165_vm15 = vweird.f32 %v1157_v40 }
 0x966   :  { %v1154_v55 = vsub.f32 %v1124_v53, %v2858_v42  ;;  %v1156_v27 = vsub.f32 %v2849_v6, %v2858_v42 }
 0x967   :  { %v1150_v48 = vsub.f32 %v1146_v44, %v1148_v57 }
 0x969   :  { %v1152_v49 = vmax.f32 %v1150_v48, 0.0 }
 0x96b   :  { %v2237_v0 = vpop.eup %2236  ;;  %v1158_v50 = vadd.f32 1e-05, %v1152_v49 }
 0x96c   :  { %v1160_v51 = vmul.f32 %v2237_v0, %v1157_v40  ;;  %vm1166_vm14 = vweird.f32 %v2237_v0 }
 0x96d   :  { %2238 = vrsqrt.f32 %v1158_v50  ;;  %vm1167_vm1 = vmor %vm1165_vm15, %vm1166_vm14  ;;  %vm1175_vm3 = vweird.f32 %v1158_v50 }
 0x96e   :  { %v1161_v14 = vmul.f32 %v2237_v0, %v1160_v51 }
 0x970   :  { %v1162_v52 = vmul.f32 0.5, %v1161_v14 }
 0x972   :  { %v1163_v2 = vsub.f32 1.5, %v1162_v52 }
 0x973   :  { %v2239_v58 = vpop.eup %2238 }
 0x974   :  { %v1170_v59 = vmul.f32 %v2239_v58, %v1158_v50  ;;  %v1164_v43 = vmul.f32 %v2237_v0, %v1163_v2  ;;  %vm1176_vm2 = vweird.f32 %v2239_v58 }
 0x975   :  { %vm1177_vm4 = vmor %vm1175_vm3, %vm1176_vm2 }
 0x976   :  { %v1171_v37 = vmul.f32 %v2239_v58, %v1170_v59  ;;  %v1168_v15 = vsel %vm1167_vm1, %v2237_v0, %v1164_v43 }
 0x977   :  { %v1179_v7 = vmul.f32 %v2865_v21, %v1168_v15  ;;  %v1181_v22 = vmul.f32 %v2871_v9, %v1168_v15 }
 0x978   :  { %v1172_v54 = vmul.f32 0.5, %v1171_v37 }
 0x979   :  { %1185 = vperm.xlu1 %2163, %v1179_v7   ;;  %1195 = vperm.xlu0 %2162, %v1181_v22  }
 0x97a   :  { %v1173_v28 = vsub.f32 1.5, %v1172_v54 }
 0x97c   :  { %v1174_v24 = vmul.f32 %v2239_v58, %v1173_v28 }
 0x97e   :  { %v1178_v25 = vsel %vm1177_vm4, %v2239_v58, %v1174_v24 }
 0x97f   :  { %v1182_v35 = vmul.f32 %v2877_v31, %v1178_v25  ;;  %v1180_v26 = vmul.f32 %v2883_v36, %v1178_v25 }
 0x981   :  { %1200 = vperm.xlu0 %2162, %v1182_v35   ;;  %1190 = vperm.xlu2 %2164, %v1180_v26  }
 0x9db   :  { %v1191_v3 = vpop.permute.xlu2 %1190 }
 0x9dc   :  { %v1204_v4 = vmul.f32 %v1191_v3, %v1154_v55 }
 0x9de   :  { %v1208_v8 = vadd.f32 %v1204_v4, %v2602_v23 }
 0x9e0   :  { %v1212_v10 = vmin.f32 %v1208_v8, 20.0  ;;  %vm1244_vm5 = vcmp.gt.f32.partialorder %v1208_v8, 20.0 }
 0x9e2   :  { %v1217_v11 = vmul.f32 1.442695, %v1212_v10 }
 0x9e4   :  { %2240 = vpow2.f32 %v1217_v11 }
 0x9ea   :  { %v2241_v12 = vpop.eup %2240 }
 0x9eb   :  { %v1186_v17 = vpop.permute.xlu1 %1185  ;;  %v1196_v18 = vpop.permute.xlu0 %1195  ;;  %v1224_v46 = vadd.f32 2.0, %v2241_v12 }
 0x9ec   :  { %v1203_v29 = vmul.f32 %v1186_v17, %v1153_v5  ;;  %v1205_v47 = vmul.f32 %v1196_v18, %v1155_v13 }
 0x9ed   :  { %v1228_v38 = vmul.f32 %v2241_v12, %v1224_v46 }
 0x9ee   :  { %v1207_v53 = vadd.f32 %v1203_v29, %v2587_v20  ;;  %v1209_v33 = vadd.f32 %v1205_v47, %v2656_v1 }
 0x9ef   :  { %v1232_v30 = vadd.f32 2.0, %v1228_v38 }
 0x9f0   :  { %v1211_v16 = vmin.f32 %v1207_v53, 20.0  ;;  %v1213_v34 = vmin.f32 %v1209_v33, 20.0  ;;  %vm1243_vm6 = vcmp.gt.f32.partialorder %v1207_v53, 20.0  ;;  %vm1245_vm8 = vcmp.gt.f32.partialorder %v1209_v33, 20.0 }
 0x9f2   :  { %v1215_v40 = vmul.f32 1.442695, %v1211_v16  ;;  %v1219_v32 = vmul.f32 1.442695, %v1213_v34 }
 0x9f3   :  { %v1201_v57 = vpop.permute.xlu0 %1200 }
 0x9f4   :  { %2242 = vpow2.f32 %v1215_v40  ;;  %v1206_v60 = vmul.f32 %v1201_v57, %v1156_v27  ;;  %v2316_v27 = vld [vmem:[%s3118_s8] ss:$0 sm:$0xff] }
 0x9f5   :  { %2244 = vpow2.f32 %v1219_v32 }
 0x9f6   :  { %v1210_v44 = vadd.f32 %v1206_v60, %v2635_v39  ;;  %2246 = vrcp.f32 %v1232_v30 }
 0x9f8   :  { %v1214_v48 = vmin.f32 %v1210_v44, 20.0  ;;  %vm1246_vm7 = vcmp.gt.f32.partialorder %v1210_v44, 20.0 }
 0x9fa   :  { %v2243_v49 = vpop.eup %2242  ;;  %v1221_v0 = vmul.f32 1.442695, %v1214_v48 }
 0x9fb   :  { %v2245_v50 = vpop.eup %2244  ;;  %v1223_v51 = vadd.f32 2.0, %v2243_v49 }
 0x9fc   :  { %2248 = vpow2.f32 %v1221_v0  ;;  %v1225_v14 = vadd.f32 2.0, %v2245_v50  ;;  %v2247_v2 = vpop.eup %2246 }
 0x9fd   :  { %v1227_v52 = vmul.f32 %v2243_v49, %v1223_v51  ;;  %v1240_v42 = vmul.f32 %v2247_v2, %v1228_v38 }
 0x9fe   :  { %v1229_v59 = vmul.f32 %v2245_v50, %v1225_v14 }
 0x9ff   :  { %v1231_v58 = vadd.f32 2.0, %v1227_v52  ;;  %v1248_v7 = vmul.f32 %v1240_v42, %v1208_v8 }
 0xa00   :  { %v1233_v37 = vadd.f32 2.0, %v1229_v59 }
 0xa01   :  { %2250 = vrcp.f32 %v1231_v58  ;;  %v1252_v25 = vsel %vm1244_vm5, %v1208_v8, %v1248_v7 }
 0xa02   :  { %v2249_v6 = vpop.eup %2248  ;;  %2252 = vrcp.f32 %v1233_v37  ;;  %v2901_v55 = vadd.f32 %v1252_v25, %v2815_v56 }
 0xa03   :  { %v1226_v43 = vadd.f32 2.0, %v2249_v6 }
 0xa05   :  { %v1230_v15 = vmul.f32 %v2249_v6, %v1226_v43 }
 0xa07   :  { %v2251_v22 = vpop.eup %2250  ;;  %v1234_v54 = vadd.f32 2.0, %v1230_v15 }
 0xa08   :  { %v1239_v28 = vmul.f32 %v2251_v22, %v1227_v52  ;;  %v2253_v3 = vpop.eup %2252 }
 0xa09   :  { %2254 = vrcp.f32 %v1234_v54  ;;  %v1241_v12 = vmul.f32 %v2253_v3, %v1229_v59 }
 0xa0a   :  { %v1247_v24 = vmul.f32 %v1239_v28, %v1207_v53 }
 0xa0b   :  { %v1249_v13 = vmul.f32 %v1241_v12, %v1209_v33 }
 0xa0c   :  { %v1251_v35 = vsel %vm1243_vm6, %v1207_v53, %v1247_v24 }
 0xa0d   :  { %v2898_v26 = vadd.f32 %v1251_v35, %v2812_v45  ;;  %v1253_v17 = vsel %vm1245_vm8, %v1209_v33, %v1249_v13 }
 0xa0e   :  { %v2909_v56 = vadd.f32 %v1253_v17, %v2820_v41 }
 0xa0f   :  { %v2255_v4 = vpop.eup %2254  ;;  %v1259_v10 = vpack.c.bf16 %v2901_v55, %v2898_v26 }
 0xa10   :  { %v1242_v11 = vmul.f32 %v2255_v4, %v1230_v15 }
 0xa11   :  { %1269 = vmatmul.bf16.vlgmr.msrb.gmra.mxu3 %v1259_v10 }
 0xa12   :  { %v1250_v5 = vmul.f32 %v1242_v11, %v1210_v44 }
 0xa14   :  { %v1254_v8 = vsel %vm1246_vm7, %v1210_v44, %v1250_v5 }
 0xa15   :  { %v2906_v45 = vadd.f32 %v1254_v8, %v2823_v63 }
 0xa17   :  { %v1260_v18 = vpack.c.bf16 %v2906_v45, %v2909_v56 }
 0xa21   :  { %1274 = vmatmul.bf16.gmra.mxu3 %v1260_v18 }
 0xa94   :  { %v1270_v29 = vpop.f32.mrf.mxu3 }
 0xa9c   :  { %v1272_v47 = vpop.f32.mrf.mxu3 }
 0xa9d   :  { %1294 = vmatpush.msrb.mxu0 %v1272_v47 }
 0xa9f   :  { %1295 = vmatpush.msrb.mxu0 %v1270_v29 }
 0xaa0   :  { %2037 = vmatmul.msk.f32.vlgmr.msrb.gmra.mxu0 %vm75_vm0, %v2503_v61 }
 0xaa4   :  { %v1275_v46 = vpop.f32.mrf.mxu3 }
 0xaa8   :  { %2038 = vmatmul.msk.f32.gmra.mxu0 %vm75_vm0, %v2505_v62 }
 0xaac   :  { %v1277_v63 = vpop.f32.mrf.mxu3 }
 0xaad   :  { %1317 = vmatpush.msra.mxu2 %v1277_v63 }
 0xaaf   :  { %1318 = vmatpush.msra.mxu2 %v1275_v46 }
 0xab0   :  { %2039 = vmatmul.msk.f32.vlgmr.msra.gmra.mxu2 %vm75_vm0, %v2503_v61 }
 0xab8   :  { %2040 = vmatmul.msk.f32.gmra.mxu2 %vm75_vm0, %v2505_v62 }
 0xb1d   :  { %v1297_v41 = vpop.f32.mrf.mxu0 }
 0xb1e   :  { %v1326_v53 = vadd.f32 %v1297_v41, %v1270_v29 }
 0xb20   :  { %v1330_v33 = vadd.f32 %v2713_v19, %v1326_v53 }
 0xb22   :  { %v1338_v38 = vmul.f32 0.01, %v1330_v33  ;;  %vm1334_vm9 = vcmp.ge.f32.partialorder %v1330_v33, 0.0 }
 0xb24   :  { %v2925_v44 = vsel %vm1334_vm9, %v1330_v33, %v1338_v38 }
 0xb25   :  { %v1300_v16 = vpop.f32.mrf.mxu0  ;;  %v1346_v0 = vmul.f32 %v2925_v44, %v2925_v44 }
 0xb26   :  { %v1327_v40 = vadd.f32 %v1300_v16, %v1272_v47 }
 0xb28   :  { %v1331_v60 = vadd.f32 %v2316_v27, %v1327_v40 }
 0xb2a   :  { %v1339_v51 = vmul.f32 0.01, %v1331_v60  ;;  %vm1335_vm11 = vcmp.ge.f32.partialorder %v1331_v60, 0.0 }
 0xb2c   :  { %v2935_v59 = vsel %vm1335_vm11, %v1331_v60, %v1339_v51 }
 0xb2d   :  { %v1347_v43 = vmul.f32 %v2935_v59, %v2935_v59 }
 0xb33   :  { %v1320_v34 = vpop.f32.mrf.mxu2 }
 0xb34   :  { %v1328_v32 = vadd.f32 %v1320_v34, %v1275_v46 }
 0xb36   :  { %v1332_v57 = vadd.f32 %v2316_v27, %v1328_v32 }
 0xb38   :  { %v1340_v30 = vmul.f32 0.01, %v1332_v57  ;;  %vm1336_vm10 = vcmp.ge.f32.partialorder %v1332_v57, 0.0 }
 0xb3a   :  { %v2927_v48 = vsel %vm1336_vm10, %v1332_v57, %v1340_v30 }
 0xb3b   :  { %v1323_v49 = vpop.f32.mrf.mxu2  ;;  %v1350_v19 = vadd.f32 %v2927_v48, %v2925_v44  ;;  %v1348_v50 = vmul.f32 %v2927_v48, %v2927_v48 }
 0xb3c   :  { %v1329_v14 = vadd.f32 %v1323_v49, %v1277_v63 }
 0xb3d   :  { %1354 = vadd.xlane.f32.xlu1 %v1350_v19  ;;  %v1352_v52 = vadd.f32 %v1348_v50, %v1346_v0  ;;  %v2145_v0 = vld [vmem:[#allocation2 + $0x38] sm:$0xff] }
 0xb3e   :  { %v1333_v2 = vadd.f32 %v2316_v27, %v1329_v14  ;;  %1544 = vmatpush.bf16.msrb.mxu1 %v2145_v0  ;;  %v2144_v14 = vld [vmem:[#allocation2 + $0x30] sm:$0xff] }
 0xb3f   :  { %1360 = vadd.xlane.f32.xlu0 %v1352_v52 }
 0xb40   :  { %v1341_v58 = vmul.f32 0.01, %v1333_v2  ;;  %vm1337_vm12 = vcmp.ge.f32.partialorder %v1333_v2, 0.0 }
 0xb42   :  { %v2937_v6 = vsel %vm1337_vm12, %v1333_v2, %v1341_v58  ;;  %1545 = vmatpush.bf16.msrb.mxu1 %v2144_v14  ;;  %v2143_v2 = vld [vmem:[#allocation2 + $0x28] sm:$0xff] }
 0xb43   :  { %v1351_v42 = vadd.f32 %v2937_v6, %v2935_v59  ;;  %v1349_v37 = vmul.f32 %v2937_v6, %v2937_v6 }
 0xb45   :  { %1356 = vadd.xlane.f32.xlu2 %v1351_v42  ;;  %v1353_v15 = vadd.f32 %v1349_v37, %v1347_v43  ;;  %v2142_v42 = vld [vmem:[#allocation2 + $0x20] sm:$0xff] }
 0xb46   :  { %1546 = vmatpush.bf16.msrb.mxu1 %v2143_v2 }
 0xb47   :  { %1362 = vadd.xlane.f32.xlu1 %v1353_v15 }
 0xb4a   :  { %1547 = vmatpush.bf16.msrb.mxu1 %v2142_v42 }
 0xbb0   :  { %v1355_v7 = vpop.xlane.xlu1 %1354 }
 0xbb1   :  { %v2945_v22 = vmul.f32 0.00390625, %v1355_v7  ;;  %v2141_v7 = vld [vmem:[#allocation2 + $0x18] sm:$0xff] }
 0xbb2   :  { %v1361_v54 = vpop.xlane.xlu0 %1360  ;;  %1548 = vmatpush.bf16.msrb.mxu1 %v2141_v7 }
 0xbb3   :  { %v1366_v28 = vmul.f32 %v2945_v22, %v2945_v22  ;;  %v1364_v24 = vmul.f32 0.00390625, %v1361_v54  ;;  %v1372_v50 = vsub.f32 %v2925_v44, %v2945_v22  ;;  %v1374_v44 = vsub.f32 %v2927_v48, %v2945_v22 }
 0xbb5   :  { %v1368_v25 = vsub.f32 %v1364_v24, %v1366_v28 }
 0xbb7   :  { %v1370_v35 = vmax.f32 %v1368_v25, 0.0  ;;  %v2140_v25 = vld [vmem:[#allocation2 + $0x10] sm:$0xff] }
 0xbb8   :  { %v1357_v3 = vpop.xlane.xlu2 %1356  ;;  %1549 = vmatpush.bf16.msrb.mxu1 %v2140_v25 }
 0xbb9   :  { %v1376_v4 = vadd.f32 1e-05, %v1370_v35  ;;  %v2949_v10 = vmul.f32 0.00390625, %v1357_v3 }
 0xbba   :  { %v1363_v11 = vpop.xlane.xlu1 %1362 }
 0xbbb   :  { %2256 = vrsqrt.f32 %v1376_v4  ;;  %v1367_v12 = vmul.f32 %v2949_v10, %v2949_v10  ;;  %v1365_v5 = vmul.f32 0.00390625, %v1363_v11  ;;  %vm1384_vm14 = vweird.f32 %v1376_v4 }
 0xbbc   :  { %v1375_v15 = vsub.f32 %v2937_v6, %v2949_v10  ;;  %v1373_v6 = vsub.f32 %v2935_v59, %v2949_v10 }
 0xbbd   :  { %v1369_v13 = vsub.f32 %v1365_v5, %v1367_v12  ;;  %v2138_v5 = vld [vmem:[#allocation2] sm:$0xff] }
 0xbbf   :  { %v1371_v8 = vmax.f32 %v1369_v13, 0.0 }
 0xbc1   :  { %v2257_v17 = vpop.eup %2256  ;;  %v1377_v18 = vadd.f32 1e-05, %v1371_v8 }
 0xbc2   :  { %v1379_v29 = vmul.f32 %v2257_v17, %v1376_v4  ;;  %vm1385_vm13 = vweird.f32 %v2257_v17  ;;  %v2139_v4 = vld [vmem:[#allocation2 + $0x8] sm:$0xff] }
 0xbc3   :  { %2258 = vrsqrt.f32 %v1377_v18  ;;  %vm1386_vm15 = vmor %vm1384_vm14, %vm1385_vm13  ;;  %vm1394_vm2 = vweird.f32 %v1377_v18  ;;  %1550 = vmatpush.bf16.msrb.mxu1 %v2139_v4 }
 0xbc4   :  { %v1380_v47 = vmul.f32 %v2257_v17, %v1379_v29 }
 0xbc6   :  { %v1381_v46 = vmul.f32 0.5, %v1380_v47 }
 0xbc7   :  { %1551 = vmatpush.bf16.msrb.mxu1 %v2138_v5 }
 0xbc8   :  { %v1382_v63 = vsub.f32 1.5, %v1381_v46 }
 0xbc9   :  { %v2259_v41 = vpop.eup %2258 }
 0xbca   :  { %v1389_v53 = vmul.f32 %v2259_v41, %v1377_v18  ;;  %v1383_v33 = vmul.f32 %v2257_v17, %v1382_v63  ;;  %vm1395_vm1 = vweird.f32 %v2259_v41 }
 0xbcb   :  { %vm1396_vm3 = vmor %vm1394_vm2, %vm1395_vm1 }
 0xbcc   :  { %v1390_v16 = vmul.f32 %v2259_v41, %v1389_v53  ;;  %v1387_v34 = vsel %vm1386_vm15, %v2257_v17, %v1383_v33 }
 0xbcd   :  { %v1398_v38 = vmul.f32 %v2865_v21, %v1387_v34  ;;  %v1400_v40 = vmul.f32 %v2871_v9, %v1387_v34 }
 0xbce   :  { %v1391_v32 = vmul.f32 0.5, %v1390_v16 }
 0xbcf   :  { %1404 = vperm.xlu2 %2164, %v1398_v38   ;;  %1414 = vperm.xlu1 %2163, %v1400_v40  }
 0xbd0   :  { %v1392_v27 = vsub.f32 1.5, %v1391_v32 }
 0xbd2   :  { %v1393_v57 = vmul.f32 %v2259_v41, %v1392_v27 }
 0xbd4   :  { %v1397_v60 = vsel %vm1396_vm3, %v2259_v41, %v1393_v57 }
 0xbd5   :  { %v1401_v30 = vmul.f32 %v2877_v31, %v1397_v60  ;;  %v1399_v49 = vmul.f32 %v2883_v36, %v1397_v60 }
 0xbd7   :  { %1419 = vperm.xlu2 %2164, %v1401_v30   ;;  %1409 = vperm.xlu0 %2162, %v1399_v49  }
 0xc29   :  { %v1405_v19 = vpop.permute.xlu2 %1404 }
 0xc2a   :  { %v1422_v51 = vmul.f32 %v1405_v19, %v1372_v50 }
 0xc2c   :  { %v2960_v52 = vadd.f32 %v1422_v51, %v2587_v20 }
 0xc2e   :  { %v1430_v58 = vmin.f32 %v2960_v52, 20.0  ;;  %vm1462_vm4 = vcmp.gt.f32.partialorder %v2960_v52, 20.0 }
 0xc30   :  { %v1434_v43 = vmul.f32 1.442695, %v1430_v58 }
 0xc31   :  { %v1420_v37 = vpop.permute.xlu2 %1419 }
 0xc32   :  { %v1425_v54 = vmul.f32 %v1420_v37, %v1375_v15  ;;  %2260 = vpow2.f32 %v1434_v43 }
 0xc34   :  { %v2969_v3 = vadd.f32 %v1425_v54, %v2635_v39 }
 0xc36   :  { %v1433_v48 = vmin.f32 %v2969_v3, 20.0  ;;  %vm1465_vm7 = vcmp.gt.f32.partialorder %v2969_v3, 20.0 }
 0xc38   :  { %v2261_v11 = vpop.eup %2260  ;;  %v1440_v29 = vmul.f32 1.442695, %v1433_v48 }
 0xc39   :  { %v1442_v8 = vadd.f32 2.0, %v2261_v11 }
 0xc3b   :  { %v1446_v46 = vmul.f32 %v2261_v11, %v1442_v8 }
 0xc3d   :  { %v1450_v41 = vadd.f32 2.0, %v1446_v46 }
 0xc41   :  { %v1415_v28 = vpop.permute.xlu1 %1414 }
 0xc42   :  { %v1424_v24 = vmul.f32 %v1415_v28, %v1374_v44 }
 0xc44   :  { %v1428_v35 = vadd.f32 %v1424_v24, %v2656_v1 }
 0xc46   :  { %v1432_v12 = vmin.f32 %v1428_v35, 20.0  ;;  %vm1464_vm6 = vcmp.gt.f32.partialorder %v1428_v35, 20.0 }
 0xc48   :  { %v1438_v17 = vmul.f32 1.442695, %v1432_v12  ;;  %v2169_v12 = vld [vmem:[%s3120_s10] ss:$0 sm:$0xff] }
 0xc49   :  { %v1410_v22 = vpop.permute.xlu0 %1409 }
 0xc4a   :  { %v1423_v13 = vmul.f32 %v1410_v22, %v1373_v6  ;;  %2262 = vpow2.f32 %v1438_v17 }
 0xc4b   :  { %2264 = vpow2.f32 %v1440_v29 }
 0xc4c   :  { %v1427_v18 = vadd.f32 %v1423_v13, %v2602_v23 }
 0xc4e   :  { %v1431_v47 = vmin.f32 %v1427_v18, 20.0  ;;  %vm1463_vm5 = vcmp.gt.f32.partialorder %v1427_v18, 20.0 }
 0xc50   :  { %v1436_v63 = vmul.f32 1.442695, %v1431_v47  ;;  %v2263_v59 = vpop.eup %2262 }
 0xc51   :  { %v2265_v10 = vpop.eup %2264  ;;  %v1444_v16 = vadd.f32 2.0, %v2263_v59 }
 0xc52   :  { %2266 = vpow2.f32 %v1436_v63  ;;  %v1445_v38 = vadd.f32 2.0, %v2265_v10 }
 0xc53   :  { %2268 = vrcp.f32 %v1450_v41  ;;  %v1448_v27 = vmul.f32 %v2263_v59, %v1444_v16 }
 0xc54   :  { %v1449_v57 = vmul.f32 %v2265_v10, %v1445_v38 }
 0xc55   :  { %v1452_v30 = vadd.f32 2.0, %v1448_v27 }
 0xc56   :  { %v1453_v49 = vadd.f32 2.0, %v1449_v57 }
 0xc58   :  { %v2267_v53 = vpop.eup %2266 }
 0xc59   :  { %v1443_v33 = vadd.f32 2.0, %v2267_v53  ;;  %v2269_v40 = vpop.eup %2268 }
 0xc5a   :  { %v1458_v60 = vmul.f32 %v2269_v40, %v1446_v46 }
 0xc5b   :  { %v1447_v34 = vmul.f32 %v2267_v53, %v1443_v33 }
 0xc5c   :  { %v1466_v19 = vmul.f32 %v1458_v60, %v2960_v52 }
 0xc5d   :  { %v1451_v32 = vadd.f32 2.0, %v1447_v34 }
 0xc5e   :  { %v1470_v14 = vsel %vm1462_vm4, %v2960_v52, %v1466_v19 }
 0xc5f   :  { %2270 = vrcp.f32 %v1451_v32  ;;  %v2979_v42 = vadd.f32 %v1470_v14, %v2898_v26 }
 0xc60   :  { %2272 = vrcp.f32 %v1452_v30 }
 0xc61   :  { %2274 = vrcp.f32 %v1453_v49 }
 0xc65   :  { %v2271_v0 = vpop.eup %2270 }
 0xc66   :  { %v1459_v50 = vmul.f32 %v2271_v0, %v1447_v34  ;;  %v2273_v58 = vpop.eup %2272 }
 0xc67   :  { %v2275_v37 = vpop.eup %2274  ;;  %v1460_v7 = vmul.f32 %v2273_v58, %v1448_v27 }
 0xc68   :  { %v1467_v51 = vmul.f32 %v1459_v50, %v1427_v18  ;;  %v1461_v44 = vmul.f32 %v2275_v37, %v1449_v57 }
 0xc69   :  { %v1468_v54 = vmul.f32 %v1460_v7, %v1428_v35 }
 0xc6a   :  { %v1471_v2 = vsel %vm1463_vm5, %v1427_v18, %v1467_v51  ;;  %v1469_v28 = vmul.f32 %v1461_v44, %v2969_v3 }
 0xc6b   :  { %v2982_v43 = vadd.f32 %v1471_v2, %v2901_v55  ;;  %v1472_v52 = vsel %vm1464_vm6, %v1428_v35, %v1468_v54  ;;  %vm1880_vm6 = vcmask 261120  }
 0xc6c   :  { %v1473_v26 = vsel %vm1465_vm7, %v2969_v3, %v1469_v28  ;;  %v2990_v24 = vadd.f32 %v1472_v52, %v2909_v56 }
 0xc6d   :  { %v1478_v15 = vpack.c.bf16 %v2982_v43, %v2979_v42  ;;  %v2993_v55 = vadd.f32 %v1473_v26, %v2906_v45 }
 0xc6f   :  { %1552 = vmatmul.bf16.vlgmr.msrb.gmra.mxu1 %v1478_v15  ;;  %v1479_v25 = vpack.c.bf16 %v2993_v55, %v2990_v24 }
 0xc7f   :  { %1557 = vmatmul.bf16.gmra.mxu1 %v1479_v25 }
 0xcec   :  { %v1553_v4 = vpop.f32.mrf.mxu1 }
 0xcf4   :  { %v1555_v11 = vpop.f32.mrf.mxu1 }
 0xcf5   :  { %1577 = vmatpush.msra.mxu0 %v1555_v11 }
 0xcf7   :  { %1578 = vmatpush.msra.mxu0 %v1553_v4 }
 0xcf8   :  { %2073 = vmatmul.msk.f32.vlgmr.msra.gmra.mxu0 %vm75_vm0, %v2503_v61 }
 0xcfc   :  { %v1558_v35 = vpop.f32.mrf.mxu1 }
 0xd00   :  { %2074 = vmatmul.msk.f32.gmra.mxu0 %vm75_vm0, %v2505_v62 }
 0xd04   :  { %v1560_v56 = vpop.f32.mrf.mxu1 }
 0xd05   :  { %1600 = vmatpush.msrb.mxu2 %v1560_v56 }
 0xd07   :  { %1601 = vmatpush.msrb.mxu2 %v1558_v35 }
 0xd08   :  { %2075 = vmatmul.msk.f32.vlgmr.msrb.gmra.mxu2 %vm75_vm0, %v2503_v61 }
 0xd10   :  { %2076 = vmatmul.msk.f32.gmra.mxu2 %vm75_vm0, %v2505_v62 }
 0xd75   :  { %v1580_v45 = vpop.f32.mrf.mxu0 }
 0xd76   :  { %v1609_v3 = vadd.f32 %v1580_v45, %v1553_v4 }
 0xd78   :  { %v1617_v6 = vadd.f32 %v2169_v12, %v1609_v3 }
 0xd7a   :  { %v1625_v5 = vmul.f32 0.01, %v1617_v6  ;;  %vm1621_vm8 = vcmp.ge.f32.partialorder %v1617_v6, 0.0 }
 0xd7c   :  { %v3008_v61 = vsel %vm1621_vm8, %v1617_v6, %v1625_v5 }
 0xd7d   :  { %v1583_v48 = vpop.f32.mrf.mxu0  ;;  %v1633_v63 = vmul.f32 %v3008_v61, %v3008_v61 }
 0xd7e   :  { %v1610_v13 = vadd.f32 %v1583_v48, %v1555_v11 }
 0xd80   :  { %v1618_v18 = vadd.f32 %v2169_v12, %v1610_v13 }
 0xd82   :  { %v1626_v59 = vmul.f32 0.01, %v1618_v18  ;;  %vm1622_vm0 = vcmp.ge.f32.partialorder %v1618_v18, 0.0 }
 0xd84   :  { %v3018_v34 = vsel %vm1622_vm0, %v1618_v18, %v1626_v59 }
 0xd85   :  { %v1634_v32 = vmul.f32 %v3018_v34, %v3018_v34 }
 0xd8b   :  { %v1603_v22 = vpop.f32.mrf.mxu2 }
 0xd8c   :  { %v1611_v8 = vadd.f32 %v1603_v22, %v1558_v35 }
 0xd8e   :  { %v1619_v17 = vadd.f32 %v2169_v12, %v1611_v8 }
 0xd90   :  { %v1627_v29 = vmul.f32 0.01, %v1619_v17  ;;  %vm1623_vm9 = vcmp.ge.f32.partialorder %v1619_v17, 0.0 }
 0xd92   :  { %v3010_v62 = vsel %vm1623_vm9, %v1619_v17, %v1627_v29 }
 0xd93   :  { %v1606_v47 = vpop.f32.mrf.mxu2  ;;  %v1637_v46 = vadd.f32 %v3010_v62, %v3008_v61  ;;  %v1635_v41 = vmul.f32 %v3010_v62, %v3010_v62 }
 0xd94   :  { %v1612_v10 = vadd.f32 %v1606_v47, %v1560_v56 }
 0xd95   :  { %1641 = vadd.xlane.f32.xlu0 %v1637_v46  ;;  %v1639_v53 = vadd.f32 %v1635_v41, %v1633_v63 }
 0xd96   :  { %v1620_v33 = vadd.f32 %v2169_v12, %v1612_v10  ;;  %v2151_v10 = vld [vmem:[%s3123_s13 + $0x28] sm:$0xff] }
 0xd97   :  { %1647 = vadd.xlane.f32.xlu1 %v1639_v53 }
 0xd98   :  { %v1628_v16 = vmul.f32 0.01, %v1620_v33  ;;  %vm1624_vm10 = vcmp.ge.f32.partialorder %v1620_v33, 0.0 }
 0xd9a   :  { %v1632_v38 = vsel %vm1624_vm10, %v1620_v33, %v1628_v16 }
 0xd9b   :  { %v1638_v40 = vadd.f32 %v1632_v38, %v3018_v34  ;;  %v1636_v27 = vmul.f32 %v1632_v38, %v1632_v38 }
 0xd9d   :  { %1643 = vadd.xlane.f32.xlu2 %v1638_v40  ;;  %v1640_v57 = vadd.f32 %v1636_v27, %v1634_v32 }
 0xd9f   :  { %1649 = vadd.xlane.f32.xlu0 %v1640_v57  ;;  %v2148_v57 = vld [vmem:[%s3123_s13 + $0x10] sm:$0xff] }
 0xe08   :  { %v1642_v60 = vpop.xlane.xlu0 %1641 }
 0xe09   :  { %v3023_v30 = vmul.f32 0.00390625, %v1642_v60 }
 0xe0a   :  { %v1648_v49 = vpop.xlane.xlu1 %1647 }
 0xe0b   :  { %v1653_v19 = vmul.f32 %v3023_v30, %v3023_v30  ;;  %v1651_v0 = vmul.f32 0.00390625, %v1648_v49  ;;  %v1661_v40 = vsub.f32 %v3010_v62, %v3023_v30 }
 0xe0d   :  { %v1655_v50 = vsub.f32 %v1651_v0, %v1653_v19 }
 0xe0f   :  { %v1657_v51 = vmax.f32 %v1655_v50, 0.0  ;;  %v2147_v50 = vld [vmem:[%s3123_s13 + $0x8] sm:$0xff] }
 0xe10   :  { %v1644_v14 = vpop.xlane.xlu2 %1643 }
 0xe11   :  { %v1663_v2 = vadd.f32 1e-05, %v1657_v51  ;;  %v3027_v58 = vmul.f32 0.00390625, %v1644_v14 }
 0xe12   :  { %v1650_v37 = vpop.xlane.xlu0 %1649 }
 0xe13   :  { %2276 = vrsqrt.f32 %v1663_v2  ;;  %v1654_v15 = vmul.f32 %v3027_v58, %v3027_v58  ;;  %v1652_v7 = vmul.f32 0.00390625, %v1650_v37  ;;  %vm1671_vm12 = vweird.f32 %v1663_v2 }
 0xe14   :  { %v1662_v47 = vsub.f32 %v1632_v38, %v3027_v58 }
 0xe15   :  { %v1656_v44 = vsub.f32 %v1652_v7, %v1654_v15 }
 0xe17   :  { %v1658_v54 = vmax.f32 %v1656_v44, 0.0 }
 0xe19   :  { %v2277_v28 = vpop.eup %2276  ;;  %v1664_v52 = vadd.f32 1e-05, %v1658_v54 }
 0xe1a   :  { %v1666_v26 = vmul.f32 %v2277_v28, %v1663_v2  ;;  %vm1672_vm11 = vweird.f32 %v2277_v28  ;;  %v2146_v2 = vld [vmem:[%s3123_s13] sm:$0xff] }
 0xe1b   :  { %2278 = vrsqrt.f32 %v1664_v52  ;;  %vm1673_vm13 = vmor %vm1671_vm12, %vm1672_vm11  ;;  %vm1681_vm15 = vweird.f32 %v1664_v52 }
 0xe1c   :  { %v1667_v25 = vmul.f32 %v2277_v28, %v1666_v26 }
 0xe1e   :  { %v1668_v4 = vmul.f32 0.5, %v1667_v25 }
 0xe20   :  { %v1669_v11 = vsub.f32 1.5, %v1668_v4 }
 0xe21   :  { %v2279_v35 = vpop.eup %2278 }
 0xe22   :  { %v1676_v56 = vmul.f32 %v2279_v35, %v1664_v52  ;;  %v1670_v45 = vmul.f32 %v2277_v28, %v1669_v11  ;;  %vm1682_vm14 = vweird.f32 %v2279_v35 }
 0xe23   :  { %vm1683_vm1 = vmor %vm1681_vm15, %vm1682_vm14 }
 0xe24   :  { %v1677_v3 = vmul.f32 %v2279_v35, %v1676_v56  ;;  %v1674_v12 = vsel %vm1673_vm13, %v2277_v28, %v1670_v45 }
 0xe25   :  { %v1685_v6 = vmul.f32 %v2865_v21, %v1674_v12  ;;  %v1687_v48 = vmul.f32 %v2871_v9, %v1674_v12  ;;  %v1659_v21 = vsub.f32 %v3008_v61, %v3023_v30  ;;  %v2153_v9 = vld [vmem:[%s3123_s13 + $0x38] sm:$0xff]  ;;  %v1660_v30 = vsub.f32 %v3018_v34, %v3027_v58 }
 0xe26   :  { %v1678_v22 = vmul.f32 0.5, %v1677_v3  ;;  %1835 = vmatpush.bf16.msra.mxu3 %v2153_v9 }
 0xe27   :  { %1691 = vperm.xlu2 %2164, %v1685_v6   ;;  %1701 = vperm.xlu0 %2162, %v1687_v48  }
 0xe28   :  { %v1679_v5 = vsub.f32 1.5, %v1678_v22 }
 0xe2a   :  { %v1680_v13 = vmul.f32 %v2279_v35, %v1679_v5 }
 0xe2c   :  { %v1684_v8 = vsel %vm1683_vm1, %v2279_v35, %v1680_v13 }
 0xe2d   :  { %v1688_v17 = vmul.f32 %v2877_v31, %v1684_v8  ;;  %v1686_v18 = vmul.f32 %v2883_v36, %v1684_v8  ;;  %v2152_v31 = vld [vmem:[%s3123_s13 + $0x30] sm:$0xff] }
 0xe2e   :  { %1836 = vmatpush.bf16.msra.mxu3 %v2152_v31 }
 0xe2f   :  { %1706 = vperm.xlu2 %2164, %v1688_v17   ;;  %1696 = vperm.xlu1 %2163, %v1686_v18  }
 0xe32   :  { %1837 = vmatpush.bf16.msra.mxu3 %v2151_v10 }
 0xe81   :  { %v1692_v29 = vpop.permute.xlu2 %1691 }
 0xe82   :  { %v1709_v46 = vmul.f32 %v1692_v29, %v1659_v21 }
 0xe84   :  { %v3048_v59 = vadd.f32 %v1709_v46, %v2587_v20  ;;  %v2149_v20 = vld [vmem:[%s3123_s13 + $0x18] sm:$0xff] }
 0xe86   :  { %v1717_v33 = vmin.f32 %v3048_v59, 20.0  ;;  %vm1749_vm4 = vcmp.gt.f32.partialorder %v3048_v59, 20.0 }
 0xe88   :  { %v1721_v16 = vmul.f32 1.442695, %v1717_v33 }
 0xe89   :  { %v1707_v63 = vpop.permute.xlu2 %1706 }
 0xe8a   :  { %v1712_v41 = vmul.f32 %v1707_v63, %v1662_v47 }
 0xe8c   :  { %v3045_v36 = vadd.f32 %v1712_v41, %v2635_v39  ;;  %v2150_v39 = vld [vmem:[%s3123_s13 + $0x20] sm:$0xff] }
 0xe8d   :  { %1838 = vmatpush.bf16.msra.mxu3 %v2150_v39 }
 0xe8e   :  { %v1720_v61 = vmin.f32 %v3045_v36, 20.0  ;;  %vm1752_vm2 = vcmp.gt.f32.partialorder %v3045_v36, 20.0 }
 0xe90   :  { %v1727_v53 = vmul.f32 1.442695, %v1720_v61 }
 0xe91   :  { %1839 = vmatpush.bf16.msra.mxu3 %v2149_v20 }
 0xe92   :  { %2280 = vpow2.f32 %v1727_v53 }
 0xe93   :  { %2282 = vpow2.f32 %v1721_v16 }
 0xe95   :  { %1840 = vmatpush.bf16.msra.mxu3 %v2148_v57 }
 0xe98   :  { %v2281_v38 = vpop.eup %2280 }
 0xe99   :  { %v1702_v32 = vpop.permute.xlu0 %1701  ;;  %v1732_v60 = vadd.f32 2.0, %v2281_v38  ;;  %v2283_v0 = vpop.eup %2282  ;;  %1841 = vmatpush.bf16.msra.mxu3 %v2147_v50 }
 0xe9a   :  { %v1711_v27 = vmul.f32 %v1702_v32, %v1661_v40  ;;  %v1729_v37 = vadd.f32 2.0, %v2283_v0 }
 0xe9b   :  { %v1736_v51 = vmul.f32 %v2281_v38, %v1732_v60 }
 0xe9c   :  { %v1715_v49 = vadd.f32 %v1711_v27, %v2656_v1  ;;  %v1733_v44 = vmul.f32 %v2283_v0, %v1729_v37 }
 0xe9d   :  { %v1740_v15 = vadd.f32 2.0, %v1736_v51  ;;  %1842 = vmatpush.bf16.msra.mxu3 %v2146_v2 }
 0xe9e   :  { %v1719_v19 = vmin.f32 %v1715_v49, 20.0  ;;  %v1737_v34 = vadd.f32 2.0, %v1733_v44  ;;  %vm1751_vm3 = vcmp.gt.f32.partialorder %v1715_v49, 20.0 }
 0xea0   :  { %v1725_v62 = vmul.f32 1.442695, %v1719_v19 }
 0xea1   :  { %v1697_v14 = vpop.permute.xlu1 %1696 }
 0xea2   :  { %2284 = vpow2.f32 %v1725_v62  ;;  %v1710_v1 = vmul.f32 %v1697_v14, %v1660_v30 }
 0xea3   :  { %2286 = vrcp.f32 %v1740_v15 }
 0xea4   :  { %v1714_v7 = vadd.f32 %v1710_v1, %v2602_v23 }
 0xea6   :  { %v1718_v54 = vmin.f32 %v1714_v7, 20.0  ;;  %vm1750_vm5 = vcmp.gt.f32.partialorder %v1714_v7, 20.0 }
 0xea8   :  { %v2285_v28 = vpop.eup %2284  ;;  %v1723_v52 = vmul.f32 1.442695, %v1718_v54 }
 0xea9   :  { %v1731_v26 = vadd.f32 2.0, %v2285_v28  ;;  %v2287_v25 = vpop.eup %2286 }
 0xeaa   :  { %2288 = vpow2.f32 %v1723_v52  ;;  %v1748_v35 = vmul.f32 %v2287_v25, %v1736_v51 }
 0xeab   :  { %v1735_v58 = vmul.f32 %v2285_v28, %v1731_v26  ;;  %2290 = vrcp.f32 %v1737_v34 }
 0xeac   :  { %v1756_v23 = vmul.f32 %v1748_v35, %v3045_v36 }
 0xead   :  { %v1739_v4 = vadd.f32 2.0, %v1735_v58 }
 0xeae   :  { %v1760_v13 = vsel %vm1752_vm2, %v3045_v36, %v1756_v23 }
 0xeaf   :  { %2292 = vrcp.f32 %v1739_v4  ;;  %v1764_v18 = vadd.f32 %v1760_v13, %v2993_v55  ;;  %v2154_v55 = vld [vmem:[%s3125_s15] sm:$0xff] }
 0xeb0   :  { %v2289_v11 = vpop.eup %2288 }
 0xeb1   :  { %v1730_v56 = vadd.f32 2.0, %v2289_v11  ;;  %v2291_v3 = vpop.eup %2290 }
 0xeb2   :  { %v1745_v22 = vmul.f32 %v2291_v3, %v1733_v44 }
 0xeb3   :  { %v1734_v45 = vmul.f32 %v2289_v11, %v1730_v56 }
 0xeb4   :  { %v1753_v29 = vmul.f32 %v1745_v22, %v3048_v59 }
 0xeb5   :  { %v2293_v12 = vpop.eup %2292  ;;  %v1738_v6 = vadd.f32 2.0, %v1734_v45 }
 0xeb6   :  { %v1747_v48 = vmul.f32 %v2293_v12, %v1735_v58  ;;  %v1757_v63 = vsel %vm1749_vm4, %v3048_v59, %v1753_v29 }
 0xeb7   :  { %2294 = vrcp.f32 %v1738_v6  ;;  %v1761_v31 = vadd.f32 %v1757_v63, %v2979_v42  ;;  %v2170_v42 = vld [vmem:[%s3124_s14] ss:$0 sm:$0xff] }
 0xeb8   :  { %v1755_v5 = vmul.f32 %v1747_v48, %v1715_v49 }
 0xeba   :  { %v1759_v8 = vsel %vm1751_vm3, %v1715_v49, %v1755_v5  ;;  %v2171_v49 = vld [vmem:[%s3126_s16] ss:$0 sm:$0xff] }
 0xebb   :  { %v1763_v17 = vadd.f32 %v1759_v8, %v2990_v24  ;;  %v2155_v24 = vld [vmem:[%s3125_s15 + $0x8] sm:$0xff] }
 0xebc   :  { %1893 = vmatpush.bf16.msrb.mxu0 %v2155_v24 }
 0xebd   :  { %v2295_v21 = vpop.eup %2294  ;;  %v1766_v9 = vpack.c.bf16 %v1764_v18, %v1763_v17 }
 0xebe   :  { %v1746_v47 = vmul.f32 %v2295_v21, %v1734_v45 }
 0xec0   :  { %v1754_v46 = vmul.f32 %v1746_v47, %v1714_v7  ;;  %1894 = vmatpush.bf16.msrb.mxu0 %v2154_v55 }
 0xec2   :  { %v1758_v41 = vsel %vm1750_vm5, %v1714_v7, %v1754_v46 }
 0xec3   :  { %v1762_v36 = vadd.f32 %v1758_v41, %v2982_v43 }
 0xec5   :  { %v1765_v61 = vpack.c.bf16 %v1762_v36, %v1761_v31 }
 0xec7   :  { %1843 = vmatmul.bf16.vlgmr.msra.gmra.mxu3 %v1765_v61 }
 0xed7   :  { %1848 = vmatmul.bf16.gmra.mxu3 %v1766_v9 }
 0xf4a   :  { %v1844_v59 = vpop.f32.mrf.mxu3 }
 0xf4b   :  { %v1845_v10 = vadd.f32 %v2170_v42, %v1844_v59 }
 0xf4d   :  { %v1854_v33 = vmax.f32 %v1845_v10, 0.0 }
 0xf52   :  { %v1846_v43 = vpop.f32.mrf.mxu3 }
 0xf53   :  { %v1847_v53 = vadd.f32 %v2170_v42, %v1846_v43 }
 0xf55   :  { %v1855_v39 = vmax.f32 %v1847_v53, 0.0 }
 0xf57   :  { %v1858_v16 = vpack.c.bf16 %v1855_v39, %v1854_v33 }
 0xf59   :  { %2117 = vmatmul.msk.bf16.vlgmr.msrb.gmra.mxu0 %vm1880_vm6, %v1858_v16 }
 0xf5a   :  { %v1849_v20 = vpop.f32.mrf.mxu3 }
 0xf5b   :  { %v1850_v38 = vadd.f32 %v2170_v42, %v1849_v20 }
 0xf5d   :  { %v1856_v27 = vmax.f32 %v1850_v38, 0.0 }
 0xf62   :  { %v1851_v40 = vpop.f32.mrf.mxu3 }
 0xf63   :  { %v1852_v32 = vadd.f32 %v2170_v42, %v1851_v40 }
 0xf65   :  { %v1857_v57 = vmax.f32 %v1852_v32, 0.0 }
 0xf67   :  { %v1859_v60 = vpack.c.bf16 %v1857_v57, %v1856_v27 }
 0xf69   :  { %2118 = vmatmul.msk.bf16.gmra.mxu0 %vm1880_vm6, %v1859_v60 }
 0xfd6   :  { %v1896_v19 = vpop.f32.mrf.mxu0 }
 0xfd7   :  { %v1897_v0 = vadd.f32 %v2171_v49, %v1896_v19 }
 0xfd9   :  { %v1906_v50 = vmax.f32 %v1897_v0, -60.0 }
 0xfdb   :  { %v1910_v51 = vsub.f32 0.0, %v1906_v50 }
 0xfdd   :  { %v1914_v62 = vmul.f32 1.442695, %v1910_v51 }
 0xfde   :  { %v1898_v30 = vpop.f32.mrf.mxu0 }
 0xfdf   :  { %2296 = vpow2.f32 %v1914_v62  ;;  %v1899_v14 = vadd.f32 %v2171_v49, %v1898_v30 }
 0xfe1   :  { %v1907_v2 = vmax.f32 %v1899_v14, -60.0 }
 0xfe3   :  { %v1911_v37 = vsub.f32 0.0, %v1907_v2 }
 0xfe5   :  { %v2297_v1 = vpop.eup %2296  ;;  %v1916_v15 = vmul.f32 1.442695, %v1911_v37 }
 0xfe6   :  { %v1922_v7 = vadd.f32 1.0, %v2297_v1  ;;  %v1901_v44 = vpop.f32.mrf.mxu0 }
 0xfe7   :  { %2298 = vpow2.f32 %v1916_v15  ;;  %v1902_v54 = vadd.f32 %v2171_v49, %v1901_v44 }
 0xfe8   :  { %2300 = vrcp.f32 %v1922_v7 }
 0xfe9   :  { %v1908_v28 = vmax.f32 %v1902_v54, -60.0 }
 0xfeb   :  { %v1912_v52 = vsub.f32 0.0, %v1908_v28 }
 0xfed   :  { %v2299_v26 = vpop.eup %2298  ;;  %v1918_v34 = vmul.f32 1.442695, %v1912_v52 }
 0xfee   :  { %v2301_v58 = vpop.eup %2300  ;;  %v1923_v25 = vadd.f32 1.0, %v2299_v26  ;;  %v1903_v4 = vpop.f32.mrf.mxu0 }
 0xfef   :  { %1930 = vst [vmem:[%s3127_s17] sm:$0xff] %v2301_v58  ;;  %2302 = vpow2.f32 %v1918_v34  ;;  %v1904_v11 = vadd.f32 %v2171_v49, %v1903_v4 }
 0xff0   :  { %2304 = vrcp.f32 %v1923_v25 }
 0xff1   :  { %v1909_v35 = vmax.f32 %v1904_v11, -60.0 }
 0xff3   :  { %v1913_v56 = vsub.f32 0.0, %v1909_v35 }
 0xff5   :  { %v2303_v45 = vpop.eup %2302  ;;  %v1920_v3 = vmul.f32 1.442695, %v1913_v56 }
 0xff6   :  { %v2305_v23 = vpop.eup %2304  ;;  %v1924_v12 = vadd.f32 1.0, %v2303_v45 }
 0xff7   :  { %1931 = vst [vmem:[%s3127_s17 + $0x8] sm:$0xff] %v2305_v23  ;;  %2306 = vpow2.f32 %v1920_v3 }
 0xff8   :  { %2308 = vrcp.f32 %v1924_v12 }
 0xffd   :  { %v2307_v6 = vpop.eup %2306 }
 0xffe   :  { %v2309_v48 = vpop.eup %2308  ;;  %v1925_v22 = vadd.f32 1.0, %v2307_v6 }
 0xfff   :  { %1932 = vst [vmem:[%s3127_s17 + $0x10] sm:$0xff] %v2309_v48 }
0x1000   :  { %2310 = vrcp.f32 %v1925_v22 }
0x1006   :  { %v2311_v5 = vpop.eup %2310 }
0x1007   :  { %1933 = vst [vmem:[%s3127_s17 + $0x18] sm:$0xff] %v2311_v5 }
0x1008   :  { %1938 = vsyncpa [#allocation3], 1 }

</bundles_post_ra>
